<compile_context>
chip_gen: v6e
topology: v6e:2x2x1
jax: 0.10.0
libtpu: 0.0.40
codegen_flags: <defaults>
</compile_context>

<pallas_src>
import functools

import jax
import jax.numpy as jnp
from jax.experimental import pallas as pl
from jax.experimental.pallas import tpu as pltpu


def _embed_gather_kernel(tok_ref, w_hbm, o_ref, buf, sems, *, tb: int):
    """Gather `tb` embedding rows per grid step with double-buffered row DMAs.

    tok_ref: SMEM int32[n_pad]        (scalar-prefetched token ids)
    w_hbm  : HBM  (d_vocab, d_model)  (raw ref, manual DMA)
    o_ref  : VMEM (tb, d_model)       (output tile)
    buf    : VMEM (2, tb, d_model)    (double-buffered gather landing zone)
    sems   : DMA semaphores (2, tb)
    """
    i = pl.program_id(0)
    n = pl.num_programs(0)

    def fetch(block_idx, slot):
        base = block_idx * tb
        for t in range(tb):  # static unroll: tb concurrent row DMAs in flight
            row = tok_ref[base + t]
            pltpu.make_async_copy(
                w_hbm.at[row], buf.at[slot, t], sems.at[slot, t]
            ).start()

    # Prime the pipeline on the first step.
    @pl.when(i == 0)
    def _():
        fetch(0, 0)

    # Prefetch the next block while the current one is consumed.
    @pl.when(i + 1 < n)
    def _():
        fetch(i + 1, (i + 1) % 2)

    slot = i % 2
    for t in range(tb):
        pltpu.make_async_copy(
            w_hbm.at[0], buf.at[slot, t], sems.at[slot, t]
        ).wait()

    o_ref[...] = buf[slot]


def embed_forward(tokens, W_E, *, return_tokens: bool = True, tb: int = 8):
    """Pallas implementation of Embed.forward.

    tokens: integer array of shape (...), values in [0, d_vocab)
    W_E:    (d_vocab, d_model) embedding table
    Returns (embeddings, tokens) if return_tokens else embeddings,
    embeddings: (..., d_model) with the same dtype as W_E.
    """
    d_vocab, d_model = W_E.shape
    lead_shape = tokens.shape
    n = 1
    for s in lead_shape:
        n *= s

    # tb must be a multiple of 8 for sublane-dense (unmasked) output stores with
    # f32 tables (use a multiple of 16 for bf16 tables).
    assert tb % 8 == 0, "tb must be a multiple of 8"

    tok_flat = tokens.reshape(n).astype(jnp.int32)

    # Pad the flat token list up to a multiple of tb (pad with row 0, a valid index);
    # padded rows are sliced off the output below.
    n_pad = pl.cdiv(n, tb) * tb
    if n_pad != n:
        tok_flat = jnp.pad(tok_flat, (0, n_pad - n))

    itemsize = jnp.dtype(W_E.dtype).itemsize
    cost = pl.CostEstimate(
        flops=0,
        transcendentals=0,
        bytes_accessed=int(2 * n_pad * d_model * itemsize + n_pad * 4),
    )

    out2d = pl.pallas_call(
        functools.partial(_embed_gather_kernel, tb=tb),
        out_shape=jax.ShapeDtypeStruct((n_pad, d_model), W_E.dtype),
        grid_spec=pltpu.PrefetchScalarGridSpec(
            num_scalar_prefetch=1,                    # tokens -> SMEM
            grid=(n_pad // tb,),
            in_specs=[pl.BlockSpec(memory_space=pl.ANY)],   # W_E stays in HBM
            out_specs=pl.BlockSpec((tb, d_model), lambda i, tok: (i, 0)),
            scratch_shapes=[
                pltpu.VMEM((2, tb, d_model), W_E.dtype),    # double-buffered gather
                pltpu.SemaphoreType.DMA((2, tb)),
            ],
        ),
        compiler_params=pltpu.CompilerParams(
            # Double-buffer prefetch carries state across steps -> sequential axis.
            dimension_semantics=("arbitrary",),
        ),
        cost_estimate=cost,
    )(tok_flat, W_E)

    embeds = out2d[:n].reshape(*lead_shape, d_model)
    if return_tokens:
        # tokens are returned untouched (identity pass-through, no kernel needed)
        return embeds, tokens
    return embeds


if __name__ == "__main__":
    # Small shapes consistent with the module: tokens (batch, pos), W_E (d_vocab, d_model)
    batch, seq = 2, 8
    d_vocab, d_model = 64, 128
    dtype = jnp.float32

    key = jax.random.PRNGKey(0)
    k_tok, k_w = jax.random.split(key)

    tokens = jax.random.randint(k_tok, (batch, seq), 0, d_vocab, dtype=jnp.int32)
    W_E = jax.random.normal(k_w, (d_vocab, d_model), dtype=dtype)

    embeds, toks_out = embed_forward(tokens, W_E, return_tokens=True)
    jax.block_until_ready((embeds, toks_out))

    # Reference check against plain JAX gather
    ref = W_E[tokens, :]
    assert embeds.shape == (batch, seq, d_model)
    assert toks_out.shape == (batch, seq)
    assert jnp.array_equal(embeds, ref)
    assert jnp.array_equal(toks_out, tokens)

    print("KERNEL_OK")
</pallas_src>

<mosaic_0001>
module attributes {stable_mosaic.version = 11 : i64} {
  func.func @_embed_gather_kernel(%arg0: i32, %arg1: memref<16xi32, #tpu.memory_space<smem>>, %arg2: memref<64x128xf32, #tpu.memory_space<any>>, %arg3: memref<8x128xf32, #tpu.memory_space<vmem>>, %arg4: memref<2x8x128xf32, #tpu.memory_space<vmem>>, %arg5: memref<2x8x!tpu.dma_semaphore, #tpu.memory_space<semaphore_mem>>) attributes {dimension_semantics = [#tpu.dimension_semantics<arbitrary>], iteration_bounds = array<i64: 2>, scalar_prefetch = 1 : i64, scratch_operands = 2 : i64, tpu.core_type = #tpu.core_type<tc>, window_params = [{}, {transform_indices = @transform_1, window_bounds = array<i64: 8, 128>}]} {
    %c0_i32 = arith.constant 0 : i32
    %0 = arith.cmpi eq, %arg0, %c0_i32 : i32
    %1 = arith.extui %0 : i1 to i32
    %c0_i32_0 = arith.constant 0 : i32
    %2 = arith.cmpi ne, %1, %c0_i32_0 : i32
    scf.if %2 {
      %c0_46 = arith.constant 0 : index
      %69 = memref.load %arg1[%c0_46] : memref<16xi32, #tpu.memory_space<smem>>
      %c0_i32_47 = arith.constant 0 : i32
      %c0_i32_48 = arith.constant 0 : i32
      %c0_i32_49 = arith.constant 0 : i32
      %c0_i32_50 = arith.constant 0 : i32
      %c0_i32_51 = arith.constant 0 : i32
      %70 = tpu.memref_slice %arg2[%69, %c0_i32_51] : memref<64x128xf32, #tpu.memory_space<any>> -> memref<1x128xf32, #tpu.memory_space<any>>
      %71 = tpu.memref_squeeze %70 : memref<1x128xf32, #tpu.memory_space<any>> -> memref<128xf32, #tpu.memory_space<any>>
      %c0_i32_52 = arith.constant 0 : i32
      %72 = tpu.memref_slice %arg4[%c0_i32_47, %c0_i32_48, %c0_i32_52] : memref<2x8x128xf32, #tpu.memory_space<vmem>> -> memref<1x1x128xf32, #tpu.memory_space<vmem>>
      %73 = tpu.memref_squeeze %72 : memref<1x1x128xf32, #tpu.memory_space<vmem>> -> memref<128xf32, #tpu.memory_space<vmem>>
      %74 = tpu.memref_slice %arg5[%c0_i32_49, %c0_i32_50] : memref<2x8x!tpu.dma_semaphore, #tpu.memory_space<semaphore_mem>> -> memref<1x1x!tpu.dma_semaphore, #tpu.memory_space<semaphore_mem>>
      %75 = tpu.memref_squeeze %74 : memref<1x1x!tpu.dma_semaphore, #tpu.memory_space<semaphore_mem>> -> memref<!tpu.dma_semaphore, #tpu.memory_space<semaphore_mem>>
      tpu.enqueue_dma source(%71 : memref<128xf32, #tpu.memory_space<any>>) target(%73 : memref<128xf32, #tpu.memory_space<vmem>>) target_semaphore(%75 : memref<!tpu.dma_semaphore, #tpu.memory_space<semaphore_mem>>)
      %c1 = arith.constant 1 : index
      %76 = memref.load %arg1[%c1] : memref<16xi32, #tpu.memory_space<smem>>
      %c0_i32_53 = arith.constant 0 : i32
      %c1_i32_54 = arith.constant 1 : i32
      %c0_i32_55 = arith.constant 0 : i32
      %c1_i32_56 = arith.constant 1 : i32
      %c0_i32_57 = arith.constant 0 : i32
      %77 = tpu.memref_slice %arg2[%76, %c0_i32_57] : memref<64x128xf32, #tpu.memory_space<any>> -> memref<1x128xf32, #tpu.memory_space<any>>
      %78 = tpu.memref_squeeze %77 : memref<1x128xf32, #tpu.memory_space<any>> -> memref<128xf32, #tpu.memory_space<any>>
      %c0_i32_58 = arith.constant 0 : i32
      %79 = tpu.memref_slice %arg4[%c0_i32_53, %c1_i32_54, %c0_i32_58] : memref<2x8x128xf32, #tpu.memory_space<vmem>> -> memref<1x1x128xf32, #tpu.memory_space<vmem>>
      %80 = tpu.memref_squeeze %79 : memref<1x1x128xf32, #tpu.memory_space<vmem>> -> memref<128xf32, #tpu.memory_space<vmem>>
      %81 = tpu.memref_slice %arg5[%c0_i32_55, %c1_i32_56] : memref<2x8x!tpu.dma_semaphore, #tpu.memory_space<semaphore_mem>> -> memref<1x1x!tpu.dma_semaphore, #tpu.memory_space<semaphore_mem>>
      %82 = tpu.memref_squeeze %81 : memref<1x1x!tpu.dma_semaphore, #tpu.memory_space<semaphore_mem>> -> memref<!tpu.dma_semaphore, #tpu.memory_space<semaphore_mem>>
      tpu.enqueue_dma source(%78 : memref<128xf32, #tpu.memory_space<any>>) target(%80 : memref<128xf32, #tpu.memory_space<vmem>>) target_semaphore(%82 : memref<!tpu.dma_semaphore, #tpu.memory_space<semaphore_mem>>)
      %c2 = arith.constant 2 : index
      %83 = memref.load %arg1[%c2] : memref<16xi32, #tpu.memory_space<smem>>
      %c0_i32_59 = arith.constant 0 : i32
      %c2_i32_60 = arith.constant 2 : i32
      %c0_i32_61 = arith.constant 0 : i32
      %c2_i32_62 = arith.constant 2 : i32
      %c0_i32_63 = arith.constant 0 : i32
      %84 = tpu.memref_slice %arg2[%83, %c0_i32_63] : memref<64x128xf32, #tpu.memory_space<any>> -> memref<1x128xf32, #tpu.memory_space<any>>
      %85 = tpu.memref_squeeze %84 : memref<1x128xf32, #tpu.memory_space<any>> -> memref<128xf32, #tpu.memory_space<any>>
      %c0_i32_64 = arith.constant 0 : i32
      %86 = tpu.memref_slice %arg4[%c0_i32_59, %c2_i32_60, %c0_i32_64] : memref<2x8x128xf32, #tpu.memory_space<vmem>> -> memref<1x1x128xf32, #tpu.memory_space<vmem>>
      %87 = tpu.memref_squeeze %86 : memref<1x1x128xf32, #tpu.memory_space<vmem>> -> memref<128xf32, #tpu.memory_space<vmem>>
      %88 = tpu.memref_slice %arg5[%c0_i32_61, %c2_i32_62] : memref<2x8x!tpu.dma_semaphore, #tpu.memory_space<semaphore_mem>> -> memref<1x1x!tpu.dma_semaphore, #tpu.memory_space<semaphore_mem>>
      %89 = tpu.memref_squeeze %88 : memref<1x1x!tpu.dma_semaphore, #tpu.memory_space<semaphore_mem>> -> memref<!tpu.dma_semaphore, #tpu.memory_space<semaphore_mem>>
      tpu.enqueue_dma source(%85 : memref<128xf32, #tpu.memory_space<any>>) target(%87 : memref<128xf32, #tpu.memory_space<vmem>>) target_semaphore(%89 : memref<!tpu.dma_semaphore, #tpu.memory_space<semaphore_mem>>)
      %c3 = arith.constant 3 : index
      %90 = memref.load %arg1[%c3] : memref<16xi32, #tpu.memory_space<smem>>
      %c0_i32_65 = arith.constant 0 : i32
      %c3_i32_66 = arith.constant 3 : i32
      %c0_i32_67 = arith.constant 0 : i32
      %c3_i32_68 = arith.constant 3 : i32
      %c0_i32_69 = arith.constant 0 : i32
      %91 = tpu.memref_slice %arg2[%90, %c0_i32_69] : memref<64x128xf32, #tpu.memory_space<any>> -> memref<1x128xf32, #tpu.memory_space<any>>
      %92 = tpu.memref_squeeze %91 : memref<1x128xf32, #tpu.memory_space<any>> -> memref<128xf32, #tpu.memory_space<any>>
      %c0_i32_70 = arith.constant 0 : i32
      %93 = tpu.memref_slice %arg4[%c0_i32_65, %c3_i32_66, %c0_i32_70] : memref<2x8x128xf32, #tpu.memory_space<vmem>> -> memref<1x1x128xf32, #tpu.memory_space<vmem>>
      %94 = tpu.memref_squeeze %93 : memref<1x1x128xf32, #tpu.memory_space<vmem>> -> memref<128xf32, #tpu.memory_space<vmem>>
      %95 = tpu.memref_slice %arg5[%c0_i32_67, %c3_i32_68] : memref<2x8x!tpu.dma_semaphore, #tpu.memory_space<semaphore_mem>> -> memref<1x1x!tpu.dma_semaphore, #tpu.memory_space<semaphore_mem>>
      %96 = tpu.memref_squeeze %95 : memref<1x1x!tpu.dma_semaphore, #tpu.memory_space<semaphore_mem>> -> memref<!tpu.dma_semaphore, #tpu.memory_space<semaphore_mem>>
      tpu.enqueue_dma source(%92 : memref<128xf32, #tpu.memory_space<any>>) target(%94 : memref<128xf32, #tpu.memory_space<vmem>>) target_semaphore(%96 : memref<!tpu.dma_semaphore, #tpu.memory_space<semaphore_mem>>)
      %c4 = arith.constant 4 : index
      %97 = memref.load %arg1[%c4] : memref<16xi32, #tpu.memory_space<smem>>
      %c0_i32_71 = arith.constant 0 : i32
      %c4_i32_72 = arith.constant 4 : i32
      %c0_i32_73 = arith.constant 0 : i32
      %c4_i32_74 = arith.constant 4 : i32
      %c0_i32_75 = arith.constant 0 : i32
      %98 = tpu.memref_slice %arg2[%97, %c0_i32_75] : memref<64x128xf32, #tpu.memory_space<any>> -> memref<1x128xf32, #tpu.memory_space<any>>
      %99 = tpu.memref_squeeze %98 : memref<1x128xf32, #tpu.memory_space<any>> -> memref<128xf32, #tpu.memory_space<any>>
      %c0_i32_76 = arith.constant 0 : i32
      %100 = tpu.memref_slice %arg4[%c0_i32_71, %c4_i32_72, %c0_i32_76] : memref<2x8x128xf32, #tpu.memory_space<vmem>> -> memref<1x1x128xf32, #tpu.memory_space<vmem>>
      %101 = tpu.memref_squeeze %100 : memref<1x1x128xf32, #tpu.memory_space<vmem>> -> memref<128xf32, #tpu.memory_space<vmem>>
      %102 = tpu.memref_slice %arg5[%c0_i32_73, %c4_i32_74] : memref<2x8x!tpu.dma_semaphore, #tpu.memory_space<semaphore_mem>> -> memref<1x1x!tpu.dma_semaphore, #tpu.memory_space<semaphore_mem>>
      %103 = tpu.memref_squeeze %102 : memref<1x1x!tpu.dma_semaphore, #tpu.memory_space<semaphore_mem>> -> memref<!tpu.dma_semaphore, #tpu.memory_space<semaphore_mem>>
      tpu.enqueue_dma source(%99 : memref<128xf32, #tpu.memory_space<any>>) target(%101 : memref<128xf32, #tpu.memory_space<vmem>>) target_semaphore(%103 : memref<!tpu.dma_semaphore, #tpu.memory_space<semaphore_mem>>)
      %c5 = arith.constant 5 : index
      %104 = memref.load %arg1[%c5] : memref<16xi32, #tpu.memory_space<smem>>
      %c0_i32_77 = arith.constant 0 : i32
      %c5_i32_78 = arith.constant 5 : i32
      %c0_i32_79 = arith.constant 0 : i32
      %c5_i32_80 = arith.constant 5 : i32
      %c0_i32_81 = arith.constant 0 : i32
      %105 = tpu.memref_slice %arg2[%104, %c0_i32_81] : memref<64x128xf32, #tpu.memory_space<any>> -> memref<1x128xf32, #tpu.memory_space<any>>
      %106 = tpu.memref_squeeze %105 : memref<1x128xf32, #tpu.memory_space<any>> -> memref<128xf32, #tpu.memory_space<any>>
      %c0_i32_82 = arith.constant 0 : i32
      %107 = tpu.memref_slice %arg4[%c0_i32_77, %c5_i32_78, %c0_i32_82] : memref<2x8x128xf32, #tpu.memory_space<vmem>> -> memref<1x1x128xf32, #tpu.memory_space<vmem>>
      %108 = tpu.memref_squeeze %107 : memref<1x1x128xf32, #tpu.memory_space<vmem>> -> memref<128xf32, #tpu.memory_space<vmem>>
      %109 = tpu.memref_slice %arg5[%c0_i32_79, %c5_i32_80] : memref<2x8x!tpu.dma_semaphore, #tpu.memory_space<semaphore_mem>> -> memref<1x1x!tpu.dma_semaphore, #tpu.memory_space<semaphore_mem>>
      %110 = tpu.memref_squeeze %109 : memref<1x1x!tpu.dma_semaphore, #tpu.memory_space<semaphore_mem>> -> memref<!tpu.dma_semaphore, #tpu.memory_space<semaphore_mem>>
      tpu.enqueue_dma source(%106 : memref<128xf32, #tpu.memory_space<any>>) target(%108 : memref<128xf32, #tpu.memory_space<vmem>>) target_semaphore(%110 : memref<!tpu.dma_semaphore, #tpu.memory_space<semaphore_mem>>)
      %c6 = arith.constant 6 : index
      %111 = memref.load %arg1[%c6] : memref<16xi32, #tpu.memory_space<smem>>
      %c0_i32_83 = arith.constant 0 : i32
      %c6_i32_84 = arith.constant 6 : i32
      %c0_i32_85 = arith.constant 0 : i32
      %c6_i32_86 = arith.constant 6 : i32
      %c0_i32_87 = arith.constant 0 : i32
      %112 = tpu.memref_slice %arg2[%111, %c0_i32_87] : memref<64x128xf32, #tpu.memory_space<any>> -> memref<1x128xf32, #tpu.memory_space<any>>
      %113 = tpu.memref_squeeze %112 : memref<1x128xf32, #tpu.memory_space<any>> -> memref<128xf32, #tpu.memory_space<any>>
      %c0_i32_88 = arith.constant 0 : i32
      %114 = tpu.memref_slice %arg4[%c0_i32_83, %c6_i32_84, %c0_i32_88] : memref<2x8x128xf32, #tpu.memory_space<vmem>> -> memref<1x1x128xf32, #tpu.memory_space<vmem>>
      %115 = tpu.memref_squeeze %114 : memref<1x1x128xf32, #tpu.memory_space<vmem>> -> memref<128xf32, #tpu.memory_space<vmem>>
      %116 = tpu.memref_slice %arg5[%c0_i32_85, %c6_i32_86] : memref<2x8x!tpu.dma_semaphore, #tpu.memory_space<semaphore_mem>> -> memref<1x1x!tpu.dma_semaphore, #tpu.memory_space<semaphore_mem>>
      %117 = tpu.memref_squeeze %116 : memref<1x1x!tpu.dma_semaphore, #tpu.memory_space<semaphore_mem>> -> memref<!tpu.dma_semaphore, #tpu.memory_space<semaphore_mem>>
      tpu.enqueue_dma source(%113 : memref<128xf32, #tpu.memory_space<any>>) target(%115 : memref<128xf32, #tpu.memory_space<vmem>>) target_semaphore(%117 : memref<!tpu.dma_semaphore, #tpu.memory_space<semaphore_mem>>)
      %c7 = arith.constant 7 : index
      %118 = memref.load %arg1[%c7] : memref<16xi32, #tpu.memory_space<smem>>
      %c0_i32_89 = arith.constant 0 : i32
      %c7_i32_90 = arith.constant 7 : i32
      %c0_i32_91 = arith.constant 0 : i32
      %c7_i32_92 = arith.constant 7 : i32
      %c0_i32_93 = arith.constant 0 : i32
      %119 = tpu.memref_slice %arg2[%118, %c0_i32_93] : memref<64x128xf32, #tpu.memory_space<any>> -> memref<1x128xf32, #tpu.memory_space<any>>
      %120 = tpu.memref_squeeze %119 : memref<1x128xf32, #tpu.memory_space<any>> -> memref<128xf32, #tpu.memory_space<any>>
      %c0_i32_94 = arith.constant 0 : i32
      %121 = tpu.memref_slice %arg4[%c0_i32_89, %c7_i32_90, %c0_i32_94] : memref<2x8x128xf32, #tpu.memory_space<vmem>> -> memref<1x1x128xf32, #tpu.memory_space<vmem>>
      %122 = tpu.memref_squeeze %121 : memref<1x1x128xf32, #tpu.memory_space<vmem>> -> memref<128xf32, #tpu.memory_space<vmem>>
      %123 = tpu.memref_slice %arg5[%c0_i32_91, %c7_i32_92] : memref<2x8x!tpu.dma_semaphore, #tpu.memory_space<semaphore_mem>> -> memref<1x1x!tpu.dma_semaphore, #tpu.memory_space<semaphore_mem>>
      %124 = tpu.memref_squeeze %123 : memref<1x1x!tpu.dma_semaphore, #tpu.memory_space<semaphore_mem>> -> memref<!tpu.dma_semaphore, #tpu.memory_space<semaphore_mem>>
      tpu.enqueue_dma source(%120 : memref<128xf32, #tpu.memory_space<any>>) target(%122 : memref<128xf32, #tpu.memory_space<vmem>>) target_semaphore(%124 : memref<!tpu.dma_semaphore, #tpu.memory_space<semaphore_mem>>)
    } else {
    }
    %c1_i32 = arith.constant 1 : i32
    %3 = arith.addi %arg0, %c1_i32 : i32
    %c2_i32 = arith.constant 2 : i32
    %4 = arith.cmpi slt, %3, %c2_i32 : i32
    %5 = arith.extui %4 : i1 to i32
    %c0_i32_1 = arith.constant 0 : i32
    %6 = arith.cmpi ne, %5, %c0_i32_1 : i32
    scf.if %6 {
      %c1_i32_46 = arith.constant 1 : i32
      %69 = arith.addi %arg0, %c1_i32_46 : i32
      %c1_i32_47 = arith.constant 1 : i32
      %70 = arith.addi %arg0, %c1_i32_47 : i32
      %c2_i32_48 = arith.constant 2 : i32
      %c0_i32_49 = arith.constant 0 : i32
      %71 = arith.cmpi eq, %c2_i32_48, %c0_i32_49 : i32
      %c1_i32_50 = arith.constant 1 : i32
      %72 = arith.select %71, %c1_i32_50, %c2_i32_48 : i32
      %73 = arith.remsi %70, %72 : i32
      %c0_i32_51 = arith.constant 0 : i32
      %74 = arith.cmpi ne, %73, %c0_i32_51 : i32
      %c0_i32_52 = arith.constant 0 : i32
      %75 = arith.cmpi slt, %73, %c0_i32_52 : i32
      %c0_i32_53 = arith.constant 0 : i32
      %76 = arith.cmpi slt, %72, %c0_i32_53 : i32
      %77 = arith.xori %75, %76 : i1
      %78 = arith.andi %77, %74 : i1
      %79 = arith.addi %73, %72 : i32
      %80 = arith.select %78, %79, %73 : i32
      %c8_i32 = arith.constant 8 : i32
      %81 = arith.muli %69, %c8_i32 : i32
      %c0_i32_54 = arith.constant 0 : i32
      %82 = arith.addi %81, %c0_i32_54 : i32
      %83 = arith.index_cast %82 : i32 to index
      %84 = memref.load %arg1[%83] : memref<16xi32, #tpu.memory_space<smem>>
      %c0_i32_55 = arith.constant 0 : i32
      %c0_i32_56 = arith.constant 0 : i32
      %c0_i32_57 = arith.constant 0 : i32
      %85 = tpu.memref_slice %arg2[%84, %c0_i32_57] : memref<64x128xf32, #tpu.memory_space<any>> -> memref<1x128xf32, #tpu.memory_space<any>>
      %86 = tpu.memref_squeeze %85 : memref<1x128xf32, #tpu.memory_space<any>> -> memref<128xf32, #tpu.memory_space<any>>
      %c0_i32_58 = arith.constant 0 : i32
      %87 = tpu.memref_slice %arg4[%80, %c0_i32_55, %c0_i32_58] : memref<2x8x128xf32, #tpu.memory_space<vmem>> -> memref<1x1x128xf32, #tpu.memory_space<vmem>>
      %88 = tpu.memref_squeeze %87 : memref<1x1x128xf32, #tpu.memory_space<vmem>> -> memref<128xf32, #tpu.memory_space<vmem>>
      %89 = tpu.memref_slice %arg5[%80, %c0_i32_56] : memref<2x8x!tpu.dma_semaphore, #tpu.memory_space<semaphore_mem>> -> memref<1x1x!tpu.dma_semaphore, #tpu.memory_space<semaphore_mem>>
      %90 = tpu.memref_squeeze %89 : memref<1x1x!tpu.dma_semaphore, #tpu.memory_space<semaphore_mem>> -> memref<!tpu.dma_semaphore, #tpu.memory_space<semaphore_mem>>
      tpu.enqueue_dma source(%86 : memref<128xf32, #tpu.memory_space<any>>) target(%88 : memref<128xf32, #tpu.memory_space<vmem>>) target_semaphore(%90 : memref<!tpu.dma_semaphore, #tpu.memory_space<semaphore_mem>>)
      %c1_i32_59 = arith.constant 1 : i32
      %91 = arith.addi %81, %c1_i32_59 : i32
      %92 = arith.index_cast %91 : i32 to index
      %93 = memref.load %arg1[%92] : memref<16xi32, #tpu.memory_space<smem>>
      %c1_i32_60 = arith.constant 1 : i32
      %c1_i32_61 = arith.constant 1 : i32
      %c0_i32_62 = arith.constant 0 : i32
      %94 = tpu.memref_slice %arg2[%93, %c0_i32_62] : memref<64x128xf32, #tpu.memory_space<any>> -> memref<1x128xf32, #tpu.memory_space<any>>
      %95 = tpu.memref_squeeze %94 : memref<1x128xf32, #tpu.memory_space<any>> -> memref<128xf32, #tpu.memory_space<any>>
      %c0_i32_63 = arith.constant 0 : i32
      %96 = tpu.memref_slice %arg4[%80, %c1_i32_60, %c0_i32_63] : memref<2x8x128xf32, #tpu.memory_space<vmem>> -> memref<1x1x128xf32, #tpu.memory_space<vmem>>
      %97 = tpu.memref_squeeze %96 : memref<1x1x128xf32, #tpu.memory_space<vmem>> -> memref<128xf32, #tpu.memory_space<vmem>>
      %98 = tpu.memref_slice %arg5[%80, %c1_i32_61] : memref<2x8x!tpu.dma_semaphore, #tpu.memory_space<semaphore_mem>> -> memref<1x1x!tpu.dma_semaphore, #tpu.memory_space<semaphore_mem>>
      %99 = tpu.memref_squeeze %98 : memref<1x1x!tpu.dma_semaphore, #tpu.memory_space<semaphore_mem>> -> memref<!tpu.dma_semaphore, #tpu.memory_space<semaphore_mem>>
      tpu.enqueue_dma source(%95 : memref<128xf32, #tpu.memory_space<any>>) target(%97 : memref<128xf32, #tpu.memory_space<vmem>>) target_semaphore(%99 : memref<!tpu.dma_semaphore, #tpu.memory_space<semaphore_mem>>)
      %c2_i32_64 = arith.constant 2 : i32
      %100 = arith.addi %81, %c2_i32_64 : i32
      %101 = arith.index_cast %100 : i32 to index
      %102 = memref.load %arg1[%101] : memref<16xi32, #tpu.memory_space<smem>>
      %c2_i32_65 = arith.constant 2 : i32
      %c2_i32_66 = arith.constant 2 : i32
      %c0_i32_67 = arith.constant 0 : i32
      %103 = tpu.memref_slice %arg2[%102, %c0_i32_67] : memref<64x128xf32, #tpu.memory_space<any>> -> memref<1x128xf32, #tpu.memory_space<any>>
      %104 = tpu.memref_squeeze %103 : memref<1x128xf32, #tpu.memory_space<any>> -> memref<128xf32, #tpu.memory_space<any>>
      %c0_i32_68 = arith.constant 0 : i32
      %105 = tpu.memref_slice %arg4[%80, %c2_i32_65, %c0_i32_68] : memref<2x8x128xf32, #tpu.memory_space<vmem>> -> memref<1x1x128xf32, #tpu.memory_space<vmem>>
      %106 = tpu.memref_squeeze %105 : memref<1x1x128xf32, #tpu.memory_space<vmem>> -> memref<128xf32, #tpu.memory_space<vmem>>
      %107 = tpu.memref_slice %arg5[%80, %c2_i32_66] : memref<2x8x!tpu.dma_semaphore, #tpu.memory_space<semaphore_mem>> -> memref<1x1x!tpu.dma_semaphore, #tpu.memory_space<semaphore_mem>>
      %108 = tpu.memref_squeeze %107 : memref<1x1x!tpu.dma_semaphore, #tpu.memory_space<semaphore_mem>> -> memref<!tpu.dma_semaphore, #tpu.memory_space<semaphore_mem>>
      tpu.enqueue_dma source(%104 : memref<128xf32, #tpu.memory_space<any>>) target(%106 : memref<128xf32, #tpu.memory_space<vmem>>) target_semaphore(%108 : memref<!tpu.dma_semaphore, #tpu.memory_space<semaphore_mem>>)
      %c3_i32_69 = arith.constant 3 : i32
      %109 = arith.addi %81, %c3_i32_69 : i32
      %110 = arith.index_cast %109 : i32 to index
      %111 = memref.load %arg1[%110] : memref<16xi32, #tpu.memory_space<smem>>
      %c3_i32_70 = arith.constant 3 : i32
      %c3_i32_71 = arith.constant 3 : i32
      %c0_i32_72 = arith.constant 0 : i32
      %112 = tpu.memref_slice %arg2[%111, %c0_i32_72] : memref<64x128xf32, #tpu.memory_space<any>> -> memref<1x128xf32, #tpu.memory_space<any>>
      %113 = tpu.memref_squeeze %112 : memref<1x128xf32, #tpu.memory_space<any>> -> memref<128xf32, #tpu.memory_space<any>>
      %c0_i32_73 = arith.constant 0 : i32
      %114 = tpu.memref_slice %arg4[%80, %c3_i32_70, %c0_i32_73] : memref<2x8x128xf32, #tpu.memory_space<vmem>> -> memref<1x1x128xf32, #tpu.memory_space<vmem>>
      %115 = tpu.memref_squeeze %114 : memref<1x1x128xf32, #tpu.memory_space<vmem>> -> memref<128xf32, #tpu.memory_space<vmem>>
      %116 = tpu.memref_slice %arg5[%80, %c3_i32_71] : memref<2x8x!tpu.dma_semaphore, #tpu.memory_space<semaphore_mem>> -> memref<1x1x!tpu.dma_semaphore, #tpu.memory_space<semaphore_mem>>
      %117 = tpu.memref_squeeze %116 : memref<1x1x!tpu.dma_semaphore, #tpu.memory_space<semaphore_mem>> -> memref<!tpu.dma_semaphore, #tpu.memory_space<semaphore_mem>>
      tpu.enqueue_dma source(%113 : memref<128xf32, #tpu.memory_space<any>>) target(%115 : memref<128xf32, #tpu.memory_space<vmem>>) target_semaphore(%117 : memref<!tpu.dma_semaphore, #tpu.memory_space<semaphore_mem>>)
      %c4_i32_74 = arith.constant 4 : i32
      %118 = arith.addi %81, %c4_i32_74 : i32
      %119 = arith.index_cast %118 : i32 to index
      %120 = memref.load %arg1[%119] : memref<16xi32, #tpu.memory_space<smem>>
      %c4_i32_75 = arith.constant 4 : i32
      %c4_i32_76 = arith.constant 4 : i32
      %c0_i32_77 = arith.constant 0 : i32
      %121 = tpu.memref_slice %arg2[%120, %c0_i32_77] : memref<64x128xf32, #tpu.memory_space<any>> -> memref<1x128xf32, #tpu.memory_space<any>>
      %122 = tpu.memref_squeeze %121 : memref<1x128xf32, #tpu.memory_space<any>> -> memref<128xf32, #tpu.memory_space<any>>
      %c0_i32_78 = arith.constant 0 : i32
      %123 = tpu.memref_slice %arg4[%80, %c4_i32_75, %c0_i32_78] : memref<2x8x128xf32, #tpu.memory_space<vmem>> -> memref<1x1x128xf32, #tpu.memory_space<vmem>>
      %124 = tpu.memref_squeeze %123 : memref<1x1x128xf32, #tpu.memory_space<vmem>> -> memref<128xf32, #tpu.memory_space<vmem>>
      %125 = tpu.memref_slice %arg5[%80, %c4_i32_76] : memref<2x8x!tpu.dma_semaphore, #tpu.memory_space<semaphore_mem>> -> memref<1x1x!tpu.dma_semaphore, #tpu.memory_space<semaphore_mem>>
      %126 = tpu.memref_squeeze %125 : memref<1x1x!tpu.dma_semaphore, #tpu.memory_space<semaphore_mem>> -> memref<!tpu.dma_semaphore, #tpu.memory_space<semaphore_mem>>
      tpu.enqueue_dma source(%122 : memref<128xf32, #tpu.memory_space<any>>) target(%124 : memref<128xf32, #tpu.memory_space<vmem>>) target_semaphore(%126 : memref<!tpu.dma_semaphore, #tpu.memory_space<semaphore_mem>>)
      %c5_i32_79 = arith.constant 5 : i32
      %127 = arith.addi %81, %c5_i32_79 : i32
      %128 = arith.index_cast %127 : i32 to index
      %129 = memref.load %arg1[%128] : memref<16xi32, #tpu.memory_space<smem>>
      %c5_i32_80 = arith.constant 5 : i32
      %c5_i32_81 = arith.constant 5 : i32
      %c0_i32_82 = arith.constant 0 : i32
      %130 = tpu.memref_slice %arg2[%129, %c0_i32_82] : memref<64x128xf32, #tpu.memory_space<any>> -> memref<1x128xf32, #tpu.memory_space<any>>
      %131 = tpu.memref_squeeze %130 : memref<1x128xf32, #tpu.memory_space<any>> -> memref<128xf32, #tpu.memory_space<any>>
      %c0_i32_83 = arith.constant 0 : i32
      %132 = tpu.memref_slice %arg4[%80, %c5_i32_80, %c0_i32_83] : memref<2x8x128xf32, #tpu.memory_space<vmem>> -> memref<1x1x128xf32, #tpu.memory_space<vmem>>
      %133 = tpu.memref_squeeze %132 : memref<1x1x128xf32, #tpu.memory_space<vmem>> -> memref<128xf32, #tpu.memory_space<vmem>>
      %134 = tpu.memref_slice %arg5[%80, %c5_i32_81] : memref<2x8x!tpu.dma_semaphore, #tpu.memory_space<semaphore_mem>> -> memref<1x1x!tpu.dma_semaphore, #tpu.memory_space<semaphore_mem>>
      %135 = tpu.memref_squeeze %134 : memref<1x1x!tpu.dma_semaphore, #tpu.memory_space<semaphore_mem>> -> memref<!tpu.dma_semaphore, #tpu.memory_space<semaphore_mem>>
      tpu.enqueue_dma source(%131 : memref<128xf32, #tpu.memory_space<any>>) target(%133 : memref<128xf32, #tpu.memory_space<vmem>>) target_semaphore(%135 : memref<!tpu.dma_semaphore, #tpu.memory_space<semaphore_mem>>)
      %c6_i32_84 = arith.constant 6 : i32
      %136 = arith.addi %81, %c6_i32_84 : i32
      %137 = arith.index_cast %136 : i32 to index
      %138 = memref.load %arg1[%137] : memref<16xi32, #tpu.memory_space<smem>>
      %c6_i32_85 = arith.constant 6 : i32
      %c6_i32_86 = arith.constant 6 : i32
      %c0_i32_87 = arith.constant 0 : i32
      %139 = tpu.memref_slice %arg2[%138, %c0_i32_87] : memref<64x128xf32, #tpu.memory_space<any>> -> memref<1x128xf32, #tpu.memory_space<any>>
      %140 = tpu.memref_squeeze %139 : memref<1x128xf32, #tpu.memory_space<any>> -> memref<128xf32, #tpu.memory_space<any>>
      %c0_i32_88 = arith.constant 0 : i32
      %141 = tpu.memref_slice %arg4[%80, %c6_i32_85, %c0_i32_88] : memref<2x8x128xf32, #tpu.memory_space<vmem>> -> memref<1x1x128xf32, #tpu.memory_space<vmem>>
      %142 = tpu.memref_squeeze %141 : memref<1x1x128xf32, #tpu.memory_space<vmem>> -> memref<128xf32, #tpu.memory_space<vmem>>
      %143 = tpu.memref_slice %arg5[%80, %c6_i32_86] : memref<2x8x!tpu.dma_semaphore, #tpu.memory_space<semaphore_mem>> -> memref<1x1x!tpu.dma_semaphore, #tpu.memory_space<semaphore_mem>>
      %144 = tpu.memref_squeeze %143 : memref<1x1x!tpu.dma_semaphore, #tpu.memory_space<semaphore_mem>> -> memref<!tpu.dma_semaphore, #tpu.memory_space<semaphore_mem>>
      tpu.enqueue_dma source(%140 : memref<128xf32, #tpu.memory_space<any>>) target(%142 : memref<128xf32, #tpu.memory_space<vmem>>) target_semaphore(%144 : memref<!tpu.dma_semaphore, #tpu.memory_space<semaphore_mem>>)
      %c7_i32_89 = arith.constant 7 : i32
      %145 = arith.addi %81, %c7_i32_89 : i32
      %146 = arith.index_cast %145 : i32 to index
      %147 = memref.load %arg1[%146] : memref<16xi32, #tpu.memory_space<smem>>
      %c7_i32_90 = arith.constant 7 : i32
      %c7_i32_91 = arith.constant 7 : i32
      %c0_i32_92 = arith.constant 0 : i32
      %148 = tpu.memref_slice %arg2[%147, %c0_i32_92] : memref<64x128xf32, #tpu.memory_space<any>> -> memref<1x128xf32, #tpu.memory_space<any>>
      %149 = tpu.memref_squeeze %148 : memref<1x128xf32, #tpu.memory_space<any>> -> memref<128xf32, #tpu.memory_space<any>>
      %c0_i32_93 = arith.constant 0 : i32
      %150 = tpu.memref_slice %arg4[%80, %c7_i32_90, %c0_i32_93] : memref<2x8x128xf32, #tpu.memory_space<vmem>> -> memref<1x1x128xf32, #tpu.memory_space<vmem>>
      %151 = tpu.memref_squeeze %150 : memref<1x1x128xf32, #tpu.memory_space<vmem>> -> memref<128xf32, #tpu.memory_space<vmem>>
      %152 = tpu.memref_slice %arg5[%80, %c7_i32_91] : memref<2x8x!tpu.dma_semaphore, #tpu.memory_space<semaphore_mem>> -> memref<1x1x!tpu.dma_semaphore, #tpu.memory_space<semaphore_mem>>
      %153 = tpu.memref_squeeze %152 : memref<1x1x!tpu.dma_semaphore, #tpu.memory_space<semaphore_mem>> -> memref<!tpu.dma_semaphore, #tpu.memory_space<semaphore_mem>>
      tpu.enqueue_dma source(%149 : memref<128xf32, #tpu.memory_space<any>>) target(%151 : memref<128xf32, #tpu.memory_space<vmem>>) target_semaphore(%153 : memref<!tpu.dma_semaphore, #tpu.memory_space<semaphore_mem>>)
    } else {
    }
    %c2_i32_2 = arith.constant 2 : i32
    %c0_i32_3 = arith.constant 0 : i32
    %7 = arith.cmpi eq, %c2_i32_2, %c0_i32_3 : i32
    %c1_i32_4 = arith.constant 1 : i32
    %8 = arith.select %7, %c1_i32_4, %c2_i32_2 : i32
    %9 = arith.remsi %arg0, %8 : i32
    %c0_i32_5 = arith.constant 0 : i32
    %10 = arith.cmpi ne, %9, %c0_i32_5 : i32
    %c0_i32_6 = arith.constant 0 : i32
    %11 = arith.cmpi slt, %9, %c0_i32_6 : i32
    %c0_i32_7 = arith.constant 0 : i32
    %12 = arith.cmpi slt, %8, %c0_i32_7 : i32
    %13 = arith.xori %11, %12 : i1
    %14 = arith.andi %13, %10 : i1
    %15 = arith.addi %9, %8 : i32
    %16 = arith.select %14, %15, %9 : i32
    %c0_i32_8 = arith.constant 0 : i32
    %c0_i32_9 = arith.constant 0 : i32
    %c0_i32_10 = arith.constant 0 : i32
    %c0_i32_11 = arith.constant 0 : i32
    %17 = tpu.memref_slice %arg2[%c0_i32_8, %c0_i32_11] : memref<64x128xf32, #tpu.memory_space<any>> -> memref<1x128xf32, #tpu.memory_space<any>>
    %18 = tpu.memref_squeeze %17 : memref<1x128xf32, #tpu.memory_space<any>> -> memref<128xf32, #tpu.memory_space<any>>
    %c0_i32_12 = arith.constant 0 : i32
    %19 = tpu.memref_slice %arg4[%16, %c0_i32_9, %c0_i32_12] : memref<2x8x128xf32, #tpu.memory_space<vmem>> -> memref<1x1x128xf32, #tpu.memory_space<vmem>>
    %20 = tpu.memref_squeeze %19 : memref<1x1x128xf32, #tpu.memory_space<vmem>> -> memref<128xf32, #tpu.memory_space<vmem>>
    %21 = tpu.memref_slice %arg5[%16, %c0_i32_10] : memref<2x8x!tpu.dma_semaphore, #tpu.memory_space<semaphore_mem>> -> memref<1x1x!tpu.dma_semaphore, #tpu.memory_space<semaphore_mem>>
    %22 = tpu.memref_squeeze %21 : memref<1x1x!tpu.dma_semaphore, #tpu.memory_space<semaphore_mem>> -> memref<!tpu.dma_semaphore, #tpu.memory_space<semaphore_mem>>
    tpu.wait_dma2 semaphore(%22 : memref<!tpu.dma_semaphore, #tpu.memory_space<semaphore_mem>>) src(%18 : memref<128xf32, #tpu.memory_space<any>>) dst(%20 : memref<128xf32, #tpu.memory_space<vmem>>)
    %c0_i32_13 = arith.constant 0 : i32
    %c1_i32_14 = arith.constant 1 : i32
    %c1_i32_15 = arith.constant 1 : i32
    %c0_i32_16 = arith.constant 0 : i32
    %23 = tpu.memref_slice %arg2[%c0_i32_13, %c0_i32_16] : memref<64x128xf32, #tpu.memory_space<any>> -> memref<1x128xf32, #tpu.memory_space<any>>
    %24 = tpu.memref_squeeze %23 : memref<1x128xf32, #tpu.memory_space<any>> -> memref<128xf32, #tpu.memory_space<any>>
    %c0_i32_17 = arith.constant 0 : i32
    %25 = tpu.memref_slice %arg4[%16, %c1_i32_14, %c0_i32_17] : memref<2x8x128xf32, #tpu.memory_space<vmem>> -> memref<1x1x128xf32, #tpu.memory_space<vmem>>
    %26 = tpu.memref_squeeze %25 : memref<1x1x128xf32, #tpu.memory_space<vmem>> -> memref<128xf32, #tpu.memory_space<vmem>>
    %27 = tpu.memref_slice %arg5[%16, %c1_i32_15] : memref<2x8x!tpu.dma_semaphore, #tpu.memory_space<semaphore_mem>> -> memref<1x1x!tpu.dma_semaphore, #tpu.memory_space<semaphore_mem>>
    %28 = tpu.memref_squeeze %27 : memref<1x1x!tpu.dma_semaphore, #tpu.memory_space<semaphore_mem>> -> memref<!tpu.dma_semaphore, #tpu.memory_space<semaphore_mem>>
    tpu.wait_dma2 semaphore(%28 : memref<!tpu.dma_semaphore, #tpu.memory_space<semaphore_mem>>) src(%24 : memref<128xf32, #tpu.memory_space<any>>) dst(%26 : memref<128xf32, #tpu.memory_space<vmem>>)
    %c0_i32_18 = arith.constant 0 : i32
    %c2_i32_19 = arith.constant 2 : i32
    %c2_i32_20 = arith.constant 2 : i32
    %c0_i32_21 = arith.constant 0 : i32
    %29 = tpu.memref_slice %arg2[%c0_i32_18, %c0_i32_21] : memref<64x128xf32, #tpu.memory_space<any>> -> memref<1x128xf32, #tpu.memory_space<any>>
    %30 = tpu.memref_squeeze %29 : memref<1x128xf32, #tpu.memory_space<any>> -> memref<128xf32, #tpu.memory_space<any>>
    %c0_i32_22 = arith.constant 0 : i32
    %31 = tpu.memref_slice %arg4[%16, %c2_i32_19, %c0_i32_22] : memref<2x8x128xf32, #tpu.memory_space<vmem>> -> memref<1x1x128xf32, #tpu.memory_space<vmem>>
    %32 = tpu.memref_squeeze %31 : memref<1x1x128xf32, #tpu.memory_space<vmem>> -> memref<128xf32, #tpu.memory_space<vmem>>
    %33 = tpu.memref_slice %arg5[%16, %c2_i32_20] : memref<2x8x!tpu.dma_semaphore, #tpu.memory_space<semaphore_mem>> -> memref<1x1x!tpu.dma_semaphore, #tpu.memory_space<semaphore_mem>>
    %34 = tpu.memref_squeeze %33 : memref<1x1x!tpu.dma_semaphore, #tpu.memory_space<semaphore_mem>> -> memref<!tpu.dma_semaphore, #tpu.memory_space<semaphore_mem>>
    tpu.wait_dma2 semaphore(%34 : memref<!tpu.dma_semaphore, #tpu.memory_space<semaphore_mem>>) src(%30 : memref<128xf32, #tpu.memory_space<any>>) dst(%32 : memref<128xf32, #tpu.memory_space<vmem>>)
    %c0_i32_23 = arith.constant 0 : i32
    %c3_i32 = arith.constant 3 : i32
    %c3_i32_24 = arith.constant 3 : i32
    %c0_i32_25 = arith.constant 0 : i32
    %35 = tpu.memref_slice %arg2[%c0_i32_23, %c0_i32_25] : memref<64x128xf32, #tpu.memory_space<any>> -> memref<1x128xf32, #tpu.memory_space<any>>
    %36 = tpu.memref_squeeze %35 : memref<1x128xf32, #tpu.memory_space<any>> -> memref<128xf32, #tpu.memory_space<any>>
    %c0_i32_26 = arith.constant 0 : i32
    %37 = tpu.memref_slice %arg4[%16, %c3_i32, %c0_i32_26] : memref<2x8x128xf32, #tpu.memory_space<vmem>> -> memref<1x1x128xf32, #tpu.memory_space<vmem>>
    %38 = tpu.memref_squeeze %37 : memref<1x1x128xf32, #tpu.memory_space<vmem>> -> memref<128xf32, #tpu.memory_space<vmem>>
    %39 = tpu.memref_slice %arg5[%16, %c3_i32_24] : memref<2x8x!tpu.dma_semaphore, #tpu.memory_space<semaphore_mem>> -> memref<1x1x!tpu.dma_semaphore, #tpu.memory_space<semaphore_mem>>
    %40 = tpu.memref_squeeze %39 : memref<1x1x!tpu.dma_semaphore, #tpu.memory_space<semaphore_mem>> -> memref<!tpu.dma_semaphore, #tpu.memory_space<semaphore_mem>>
    tpu.wait_dma2 semaphore(%40 : memref<!tpu.dma_semaphore, #tpu.memory_space<semaphore_mem>>) src(%36 : memref<128xf32, #tpu.memory_space<any>>) dst(%38 : memref<128xf32, #tpu.memory_space<vmem>>)
    %c0_i32_27 = arith.constant 0 : i32
    %c4_i32 = arith.constant 4 : i32
    %c4_i32_28 = arith.constant 4 : i32
    %c0_i32_29 = arith.constant 0 : i32
    %41 = tpu.memref_slice %arg2[%c0_i32_27, %c0_i32_29] : memref<64x128xf32, #tpu.memory_space<any>> -> memref<1x128xf32, #tpu.memory_space<any>>
    %42 = tpu.memref_squeeze %41 : memref<1x128xf32, #tpu.memory_space<any>> -> memref<128xf32, #tpu.memory_space<any>>
    %c0_i32_30 = arith.constant 0 : i32
    %43 = tpu.memref_slice %arg4[%16, %c4_i32, %c0_i32_30] : memref<2x8x128xf32, #tpu.memory_space<vmem>> -> memref<1x1x128xf32, #tpu.memory_space<vmem>>
    %44 = tpu.memref_squeeze %43 : memref<1x1x128xf32, #tpu.memory_space<vmem>> -> memref<128xf32, #tpu.memory_space<vmem>>
    %45 = tpu.memref_slice %arg5[%16, %c4_i32_28] : memref<2x8x!tpu.dma_semaphore, #tpu.memory_space<semaphore_mem>> -> memref<1x1x!tpu.dma_semaphore, #tpu.memory_space<semaphore_mem>>
    %46 = tpu.memref_squeeze %45 : memref<1x1x!tpu.dma_semaphore, #tpu.memory_space<semaphore_mem>> -> memref<!tpu.dma_semaphore, #tpu.memory_space<semaphore_mem>>
    tpu.wait_dma2 semaphore(%46 : memref<!tpu.dma_semaphore, #tpu.memory_space<semaphore_mem>>) src(%42 : memref<128xf32, #tpu.memory_space<any>>) dst(%44 : memref<128xf32, #tpu.memory_space<vmem>>)
    %c0_i32_31 = arith.constant 0 : i32
    %c5_i32 = arith.constant 5 : i32
    %c5_i32_32 = arith.constant 5 : i32
    %c0_i32_33 = arith.constant 0 : i32
    %47 = tpu.memref_slice %arg2[%c0_i32_31, %c0_i32_33] : memref<64x128xf32, #tpu.memory_space<any>> -> memref<1x128xf32, #tpu.memory_space<any>>
    %48 = tpu.memref_squeeze %47 : memref<1x128xf32, #tpu.memory_space<any>> -> memref<128xf32, #tpu.memory_space<any>>
    %c0_i32_34 = arith.constant 0 : i32
    %49 = tpu.memref_slice %arg4[%16, %c5_i32, %c0_i32_34] : memref<2x8x128xf32, #tpu.memory_space<vmem>> -> memref<1x1x128xf32, #tpu.memory_space<vmem>>
    %50 = tpu.memref_squeeze %49 : memref<1x1x128xf32, #tpu.memory_space<vmem>> -> memref<128xf32, #tpu.memory_space<vmem>>
    %51 = tpu.memref_slice %arg5[%16, %c5_i32_32] : memref<2x8x!tpu.dma_semaphore, #tpu.memory_space<semaphore_mem>> -> memref<1x1x!tpu.dma_semaphore, #tpu.memory_space<semaphore_mem>>
    %52 = tpu.memref_squeeze %51 : memref<1x1x!tpu.dma_semaphore, #tpu.memory_space<semaphore_mem>> -> memref<!tpu.dma_semaphore, #tpu.memory_space<semaphore_mem>>
    tpu.wait_dma2 semaphore(%52 : memref<!tpu.dma_semaphore, #tpu.memory_space<semaphore_mem>>) src(%48 : memref<128xf32, #tpu.memory_space<any>>) dst(%50 : memref<128xf32, #tpu.memory_space<vmem>>)
    %c0_i32_35 = arith.constant 0 : i32
    %c6_i32 = arith.constant 6 : i32
    %c6_i32_36 = arith.constant 6 : i32
    %c0_i32_37 = arith.constant 0 : i32
    %53 = tpu.memref_slice %arg2[%c0_i32_35, %c0_i32_37] : memref<64x128xf32, #tpu.memory_space<any>> -> memref<1x128xf32, #tpu.memory_space<any>>
    %54 = tpu.memref_squeeze %53 : memref<1x128xf32, #tpu.memory_space<any>> -> memref<128xf32, #tpu.memory_space<any>>
    %c0_i32_38 = arith.constant 0 : i32
    %55 = tpu.memref_slice %arg4[%16, %c6_i32, %c0_i32_38] : memref<2x8x128xf32, #tpu.memory_space<vmem>> -> memref<1x1x128xf32, #tpu.memory_space<vmem>>
    %56 = tpu.memref_squeeze %55 : memref<1x1x128xf32, #tpu.memory_space<vmem>> -> memref<128xf32, #tpu.memory_space<vmem>>
    %57 = tpu.memref_slice %arg5[%16, %c6_i32_36] : memref<2x8x!tpu.dma_semaphore, #tpu.memory_space<semaphore_mem>> -> memref<1x1x!tpu.dma_semaphore, #tpu.memory_space<semaphore_mem>>
    %58 = tpu.memref_squeeze %57 : memref<1x1x!tpu.dma_semaphore, #tpu.memory_space<semaphore_mem>> -> memref<!tpu.dma_semaphore, #tpu.memory_space<semaphore_mem>>
    tpu.wait_dma2 semaphore(%58 : memref<!tpu.dma_semaphore, #tpu.memory_space<semaphore_mem>>) src(%54 : memref<128xf32, #tpu.memory_space<any>>) dst(%56 : memref<128xf32, #tpu.memory_space<vmem>>)
    %c0_i32_39 = arith.constant 0 : i32
    %c7_i32 = arith.constant 7 : i32
    %c7_i32_40 = arith.constant 7 : i32
    %c0_i32_41 = arith.constant 0 : i32
    %59 = tpu.memref_slice %arg2[%c0_i32_39, %c0_i32_41] : memref<64x128xf32, #tpu.memory_space<any>> -> memref<1x128xf32, #tpu.memory_space<any>>
    %60 = tpu.memref_squeeze %59 : memref<1x128xf32, #tpu.memory_space<any>> -> memref<128xf32, #tpu.memory_space<any>>
    %c0_i32_42 = arith.constant 0 : i32
    %61 = tpu.memref_slice %arg4[%16, %c7_i32, %c0_i32_42] : memref<2x8x128xf32, #tpu.memory_space<vmem>> -> memref<1x1x128xf32, #tpu.memory_space<vmem>>
    %62 = tpu.memref_squeeze %61 : memref<1x1x128xf32, #tpu.memory_space<vmem>> -> memref<128xf32, #tpu.memory_space<vmem>>
    %63 = tpu.memref_slice %arg5[%16, %c7_i32_40] : memref<2x8x!tpu.dma_semaphore, #tpu.memory_space<semaphore_mem>> -> memref<1x1x!tpu.dma_semaphore, #tpu.memory_space<semaphore_mem>>
    %64 = tpu.memref_squeeze %63 : memref<1x1x!tpu.dma_semaphore, #tpu.memory_space<semaphore_mem>> -> memref<!tpu.dma_semaphore, #tpu.memory_space<semaphore_mem>>
    tpu.wait_dma2 semaphore(%64 : memref<!tpu.dma_semaphore, #tpu.memory_space<semaphore_mem>>) src(%60 : memref<128xf32, #tpu.memory_space<any>>) dst(%62 : memref<128xf32, #tpu.memory_space<vmem>>)
    %65 = arith.index_cast %16 : i32 to index
    %c0 = arith.constant 0 : index
    %c0_43 = arith.constant 0 : index
    %66 = vector.load %arg4[%65, %c0, %c0_43] : memref<2x8x128xf32, #tpu.memory_space<vmem>>, vector<1x8x128xf32>
    %67 = vector.shape_cast %66 : vector<1x8x128xf32> to vector<8x128xf32>
    %c0_44 = arith.constant 0 : index
    %c0_45 = arith.constant 0 : index
    %68 = vector.load %arg3[%c0_44, %c0_45] : memref<8x128xf32, #tpu.memory_space<vmem>>, vector<8x128xf32>
    tpu.vector_store %arg3[%c0_44, %c0_45], %67 {strides = array<i32>} : memref<8x128xf32, #tpu.memory_space<vmem>>, vector<8x128xf32>,
    return
  }
  func.func @transform_1(%arg0: i32, %arg1: memref<16xi32, #tpu.memory_space<smem>>) -> (i32, i32) {
    %c0_i32 = arith.constant 0 : i32
    %c0_i32_0 = arith.constant 0 : i32
    return %arg0, %c0_i32 : i32, i32
  }
}

</mosaic_0001>

<bundles_post_ra>
// kernel: tpu_custom_call.1
= control target key start
LH: loop header
LB: loop body
LE: loop exit
PB: predicated region body
PF: predicated region fallthrough
CT: control target
= control target key end

     0   :  { %s1314_s9 = smov [#allocation5]   ;;  %s1881_s0 = inlined_call_operand.hbm [shape: s32[16], index: 0, kind: input, shape index: {}]   ;;  %s1882_s1 = inlined_call_operand.hbm [shape: f32[64,128], index: 1, kind: input, shape index: {}]   ;;  %s1883_s2 = inlined_call_operand.hbm [shape: f32[16,128], index: 2, kind: output, shape index: {}]  }
   0x1   :  { %8 = dma.hbm_to_smem %s1881_s0, 16, %s1314_s9, [#allocation4] }
   0x2   :  { %1280 = dma.done.wait [#allocation4], 16 }
   0x3   :  { %1281 = vsyncadd [#allocation4], 4294967280 }
   0x4   :  { %10 = sfence }
   0x5   :  { %11 = vsyncpa [#allocation7], 0 }
   0x6   :  { %13 = vsyncpa [#allocation7 + $0x1], 0  ;;  %s1342_s12 = smov 0   ;;  %s1344_s13 = smov 0  }
   0x7   :  { %s1346_s14 = smov 0  }
   0x8 LB: > { %s661_s0 = sadd.s32 4294967295, %s1312_s14   ;;  %s1359_s15 = sadd.s32 1, %s1312_s14   ;;  %s1312_s14 = sphi %s1346_s14, %s1900_s14   ;;  %s1308_s13 = sphi %s1344_s13, %s1899_s13   ;;  %s1304_s12 = sphi %s1342_s12, %s1898_s12  }
   0x9   : > { %s22_s16 = ssub.s32 %s1312_s14, %s1359_s15  ;;  %s25_s17 = sadd.s32 1, %s1308_s13 }
   0xa   : > { %p23_p0 = scmp.eq.s32.totalorder %s22_s16, 0  ;;  %p662_p1 = scmp.ne.s32.totalorder %s22_s16, 0 }
   0xb   : > { %p29_p2 = scmp.eq.s32.totalorder %s1312_s14, 1  ;;  %p34_p3 = scmp.ne.s32.totalorder %s1308_s13, %s1304_s12 }
   0xc   : > { %s1368_s18 = scalar_select %p23_p0, %s1308_s13, %s25_s17  }
   0xd   : > { %p1370_p4 = por %p662_p1, %p29_p2  ;;  %p35_p5 = scmp.eq.s32.totalorder %s661_s0, 1 }
   0xe   : > { %1886 = sst [smem:[#allocation60_spill]] %s1368_s18  ;;  %p663_p7 = scmp.ge.s32.totalorder %s1312_s14, 2 }
   0xf   : > { %p1374_p6 = por %p35_p5, %p34_p3  ;;  %s1884_s21 = sand.u32 (!%p663_p7), 1, %s1308_s13  }
  0x10   : > { %44 = sbr.rel (%p663_p7) target bundleno = 482 (0x1e2), region = 12  ;;  %s1382_s22 = sshll.u32 (!%p663_p7), %s1884_s21, 3 }
  0x11   : > { %s1888_s20 = scalar_select %p1374_p6, 1, 0 }
  0x12   : > { %p782_p8 = scmp.eq.s32.totalorder (!%p663_p7), %s1312_s14, 0  ;;  %s56_s23 = sld [smem:[#allocation5]] (!%p663_p7) }
  0x13   : > { %1889 = sst [smem:[#allocation61_spill]] %s1888_s20  ;;  %s1315_s25 = smov (!%p663_p7), [#allocation2]  }
  0x14   : > { %s1385_s24 = sld [smem:[#allocation5 + $0x1]] (!%p663_p7)  ;;  %s66_s26 = sshll.u32 (!%p663_p7), %s1315_s25, 4  ;;  %s1387_s26 = int_to_ptr.vmem [resolvable:$true] %s66_s26 }
  0x15   : > { %s1316_s27 = smov [#allocation2 + $0x1]   ;;  %s1391_s29 = sld [smem:[#allocation5 + $0x2]] }
  0x16   : > { %s82_s28 = sshll.u32 %s1316_s27, 4  ;;  %s1393_s30 = sld [smem:[#allocation5 + $0x3]]  ;;  %s1389_s28 = int_to_ptr.vmem [resolvable:$true] %s82_s28 }
  0x17   : > { %s1317_s4 = smov [#allocation2 + $0x2]   ;;  %s1404_s16 = scalar_lea.hbm %s1882_s1, 1024 }
  0x18   : > { %s666_s3 = sshll.u32 %s56_s23, 4  ;;  %s98_s5 = sshll.u32 %s1317_s4, 4  ;;  %s1426_s5 = int_to_ptr.vmem [resolvable:$true] %s98_s5 }
  0x19   : > { %s58_s8 = scalar_lea.hbm %s1882_s1, %s666_s3 }
  0x1a   : > { %s668_s9 = sshll.u32 %s1385_s24, 4  ;;  %s826_s10 = scalar_lea.hbm %s58_s8, 16 }
  0x1b   : > { %p827_p9 = scmp.ne.s32.totalorder %s58_s8, %s826_s10  ;;  %p831_p12 = scmp.lt.s32.totalorder %s58_s8, %s1882_s1 }
  0x1c   : > { %p832_p13 = scmp.lt.s32.totalorder %s1404_s16, %s826_s10 }
  0x1d   : > { %p828_p10 = pnand %p827_p9, %p782_p8 }
  0x1e   : > { %p833_p0 = por %p832_p13, %p831_p12 }
  0x1f   : > { %p829_p11 = pneg %p828_p10 }
  0x21   : > { %p834_p1 = pnand %p833_p0, %p829_p11 }
  0x23   : > { %837 = shalt.err (!%p834_p1)  }
  0x24   : > { %s838_s23 = scalar_lea.vmem %s1387_s26, 16  ;;  %s1415_s24 = scalar_lea.vmem %s1387_s26, 256 }
  0x25   : > { %p839_p2 = scmp.ne.s32.totalorder %s1387_s26, %s838_s23  ;;  %p845_p7 = scmp.lt.s32.totalorder %s1387_s26, %s1387_s26 }
  0x26   : > { %p846_p9 = scmp.lt.s32.totalorder %s1415_s24, %s838_s23 }
  0x27   : > { %p840_p3 = pnand %p839_p2, %p782_p8 }
  0x28   : > { %p847_p10 = por %p846_p9, %p845_p7 }
  0x29   : > { %p841_p5 = pneg %p840_p3 }
  0x2b   : > { %p848_p12 = pnand %p847_p10, %p841_p5 }
  0x2d   : > { %851 = shalt.err (!%p848_p12)  }
  0x2e   : > { %743 = dma.hbm_to_vmem [thread:$0]  (%p782_p8), %s58_s8, 16, %s1387_s26, [#allocation3] }
  0x2f   : > { %s72_s4 = scalar_lea.hbm %s1882_s1, %s668_s9 }
  0x30   : > { %s852_s6 = scalar_lea.hbm %s72_s4, 16  ;;  %p857_p1 = scmp.lt.s32.totalorder %s72_s4, %s1882_s1 }
  0x31   : > { %p853_p11 = scmp.ne.s32.totalorder %s72_s4, %s852_s6  ;;  %p858_p2 = scmp.lt.s32.totalorder %s1404_s16, %s852_s6 }
  0x33   : > { %p854_p13 = pnand %p853_p11, %p782_p8  ;;  %p859_p3 = por %p858_p2, %p857_p1 }
  0x35   : > { %p855_p0 = pneg %p854_p13 }
  0x37   : > { %p860_p5 = pnand %p859_p3, %p855_p0 }
  0x39   : > { %863 = shalt.err (!%p860_p5)  }
  0x3a   : > { %s864_s8 = scalar_lea.vmem %s1389_s28, 16  ;;  %p871_p12 = scmp.lt.s32.totalorder %s1389_s28, %s1387_s26 }
  0x3b   : > { %p865_p7 = scmp.ne.s32.totalorder %s1389_s28, %s864_s8  ;;  %p872_p11 = scmp.lt.s32.totalorder %s1415_s24, %s864_s8 }
  0x3d   : > { %p866_p9 = pnand %p865_p7, %p782_p8  ;;  %p873_p13 = por %p872_p11, %p871_p12 }
  0x3f   : > { %p867_p10 = pneg %p866_p9 }
  0x41   : > { %p874_p6 = pnand %p873_p13, %p867_p10 }
  0x43   : > { %877 = shalt.err (!%p874_p6)  }
  0x44   : > { %744 = dma.hbm_to_vmem [thread:$0]  (%p782_p8), %s72_s4, 16, %s1389_s28, [#allocation3 + $0x1] }
  0x45   : > { %s670_s9 = sshll.u32 %s1391_s29, 4  ;;  %s672_s11 = sshll.u32 %s1393_s30, 4 }
  0x46   : > { %s88_s25 = scalar_lea.hbm %s1882_s1, %s670_s9  ;;  %s1452_s3 = scalar_lea.hbm %s1882_s1, %s672_s11 }
  0x47   : > { %s878_s6 = scalar_lea.hbm %s88_s25, 16  ;;  %p883_p2 = scmp.lt.s32.totalorder %s88_s25, %s1882_s1 }
  0x48   : > { %p879_p6 = scmp.ne.s32.totalorder %s88_s25, %s878_s6  ;;  %p884_p3 = scmp.lt.s32.totalorder %s1404_s16, %s878_s6 }
  0x4a   : > { %p880_p0 = pnand %p879_p6, %p782_p8  ;;  %p885_p5 = por %p884_p3, %p883_p2 }
  0x4c   : > { %p881_p1 = pneg %p880_p0 }
  0x4e   : > { %p886_p7 = pnand %p885_p5, %p881_p1 }
  0x50   : > { %889 = shalt.err (!%p886_p7)  }
  0x51   : > { %s890_s28 = scalar_lea.vmem %s1426_s5, 16  ;;  %p897_p11 = scmp.lt.s32.totalorder %s1426_s5, %s1387_s26 }
  0x52   : > { %p891_p9 = scmp.ne.s32.totalorder %s1426_s5, %s890_s28  ;;  %p898_p13 = scmp.lt.s32.totalorder %s1415_s24, %s890_s28 }
  0x54   : > { %p892_p10 = pnand %p891_p9, %p782_p8  ;;  %p899_p6 = por %p898_p13, %p897_p11 }
  0x56   : > { %p893_p12 = pneg %p892_p10 }
  0x58   : > { %p900_p0 = pnand %p899_p6, %p893_p12 }
  0x5a   : > { %903 = shalt.err (!%p900_p0)  }
  0x5b   : > { %745 = dma.hbm_to_vmem [thread:$0]  (%p782_p8), %s88_s25, 16, %s1426_s5, [#allocation3 + $0x2] }
  0x5c   : > { %s1470_s29 = sld [smem:[#allocation5 + $0x4]]  ;;  %s1318_s30 = smov [#allocation2 + $0x3]  }
  0x5d   : > { %s114_s4 = sshll.u32 %s1318_s30, 4  ;;  %s1319_s8 = smov [#allocation2 + $0x4]   ;;  %s115_s4 = int_to_ptr.vmem [resolvable:$true] %s114_s4 }
  0x5e   : > { %s130_s9 = sshll.u32 %s1319_s8, 4  ;;  %s904_s11 = scalar_lea.hbm %s1452_s3, 16  ;;  %s131_s9 = int_to_ptr.vmem [resolvable:$true] %s130_s9 }
  0x5f   : > { %p905_p1 = scmp.ne.s32.totalorder %s1452_s3, %s904_s11  ;;  %p909_p5 = scmp.lt.s32.totalorder %s1452_s3, %s1882_s1 }
  0x60   : > { %p910_p7 = scmp.lt.s32.totalorder %s1404_s16, %s904_s11 }
  0x61   : > { %p906_p2 = pnand %p905_p1, %p782_p8 }
  0x62   : > { %p911_p9 = por %p910_p7, %p909_p5 }
  0x63   : > { %p907_p3 = pneg %p906_p2 }
  0x65   : > { %p912_p10 = pnand %p911_p9, %p907_p3 }
  0x67   : > { %915 = shalt.err (!%p912_p10)  }
  0x68   : > { %s916_s5 = scalar_lea.vmem %s115_s4, 16  ;;  %p923_p6 = scmp.lt.s32.totalorder %s115_s4, %s1387_s26 }
  0x69   : > { %p917_p12 = scmp.ne.s32.totalorder %s115_s4, %s916_s5  ;;  %p924_p0 = scmp.lt.s32.totalorder %s1415_s24, %s916_s5 }
  0x6b   : > { %p918_p11 = pnand %p917_p12, %p782_p8  ;;  %p925_p1 = por %p924_p0, %p923_p6 }
  0x6d   : > { %p919_p13 = pneg %p918_p11 }
  0x6f   : > { %p926_p2 = pnand %p925_p1, %p919_p13 }
  0x71   : > { %929 = shalt.err (!%p926_p2)  }
  0x72   : > { %746 = dma.hbm_to_vmem [thread:$0]  (%p782_p8), %s1452_s3, 16, %s115_s4, [#allocation3 + $0x3] }
  0x73   : > { %s1488_s25 = sld [smem:[#allocation5 + $0x5]]  ;;  %s674_s27 = sshll.u32 %s1470_s29, 4 }
  0x74   : > { %s1490_s23 = sld [smem:[#allocation5 + $0x6]]  ;;  %s1320_s6 = smov [#allocation2 + $0x5]  }
  0x75   : > { %s146_s7 = sshll.u32 %s1320_s6, 4  ;;  %s120_s30 = scalar_lea.hbm %s1882_s1, %s674_s27  ;;  %s1496_s7 = int_to_ptr.vmem [resolvable:$true] %s146_s7 }
  0x76   : > { %s930_s8 = scalar_lea.hbm %s120_s30, 16  ;;  %p935_p9 = scmp.lt.s32.totalorder %s120_s30, %s1882_s1 }
  0x77   : > { %p931_p3 = scmp.ne.s32.totalorder %s120_s30, %s930_s8  ;;  %p936_p10 = scmp.lt.s32.totalorder %s1404_s16, %s930_s8 }
  0x79   : > { %p932_p5 = pnand %p931_p3, %p782_p8  ;;  %p937_p12 = por %p936_p10, %p935_p9 }
  0x7b   : > { %p933_p7 = pneg %p932_p5 }
  0x7d   : > { %p938_p11 = pnand %p937_p12, %p933_p7 }
  0x7f   : > { %941 = shalt.err (!%p938_p11)  }
  0x80   : > { %s942_s29 = scalar_lea.vmem %s131_s9, 16  ;;  %p949_p1 = scmp.lt.s32.totalorder %s131_s9, %s1387_s26 }
  0x81   : > { %p943_p13 = scmp.ne.s32.totalorder %s131_s9, %s942_s29  ;;  %p950_p2 = scmp.lt.s32.totalorder %s1415_s24, %s942_s29 }
  0x83   : > { %p944_p6 = pnand %p943_p13, %p782_p8  ;;  %p951_p3 = por %p950_p2, %p949_p1 }
  0x85   : > { %p945_p0 = pneg %p944_p6 }
  0x87   : > { %p952_p5 = pnand %p951_p3, %p945_p0 }
  0x89   : > { %955 = shalt.err (!%p952_p5)  }
  0x8a   : > { %747 = dma.hbm_to_vmem [thread:$0]  (%p782_p8), %s120_s30, 16, %s131_s9, [#allocation3 + $0x4] }
  0x8b   : > { %s1510_s11 = sld [smem:[#allocation5 + $0x7]]  ;;  %s676_s0 = sshll.u32 %s1488_s25, 4 }
  0x8c   : > { %s1321_s17 = smov [#allocation2 + $0x6]   ;;  %s136_s10 = scalar_lea.hbm %s1882_s1, %s676_s0 }
  0x8d   : > { %s162_s5 = sshll.u32 %s1321_s17, 4  ;;  %s678_s28 = sshll.u32 %s1490_s23, 4  ;;  %s163_s5 = int_to_ptr.vmem [resolvable:$true] %s162_s5 }
  0x8e   : > { %s956_s8 = scalar_lea.hbm %s136_s10, 16  ;;  %p961_p12 = scmp.lt.s32.totalorder %s136_s10, %s1882_s1 }
  0x8f   : > { %p957_p7 = scmp.ne.s32.totalorder %s136_s10, %s956_s8  ;;  %p962_p11 = scmp.lt.s32.totalorder %s1404_s16, %s956_s8 }
  0x91   : > { %p958_p9 = pnand %p957_p7, %p782_p8  ;;  %p963_p13 = por %p962_p11, %p961_p12 }
  0x93   : > { %p959_p10 = pneg %p958_p9 }
  0x95   : > { %p964_p6 = pnand %p963_p13, %p959_p10 }
  0x97   : > { %967 = shalt.err (!%p964_p6)  }
  0x98   : > { %s968_s9 = scalar_lea.vmem %s1496_s7, 16  ;;  %p975_p3 = scmp.lt.s32.totalorder %s1496_s7, %s1387_s26 }
  0x99   : > { %p969_p0 = scmp.ne.s32.totalorder %s1496_s7, %s968_s9  ;;  %p976_p5 = scmp.lt.s32.totalorder %s1415_s24, %s968_s9 }
  0x9b   : > { %p970_p1 = pnand %p969_p0, %p782_p8  ;;  %p977_p7 = por %p976_p5, %p975_p3 }
  0x9d   : > { %p971_p2 = pneg %p970_p1 }
  0x9f   : > { %p978_p9 = pnand %p977_p7, %p971_p2 }
  0xa1   : > { %981 = shalt.err (!%p978_p9)  }
  0xa2   : > { %748 = dma.hbm_to_vmem [thread:$0]  (%p782_p8), %s136_s10, 16, %s1496_s7, [#allocation3 + $0x5] }
  0xa3   : > { %s152_s30 = scalar_lea.hbm %s1882_s1, %s678_s28 }
  0xa4   : > { %s982_s29 = scalar_lea.hbm %s152_s30, 16  ;;  %p987_p13 = scmp.lt.s32.totalorder %s152_s30, %s1882_s1 }
  0xa5   : > { %p983_p10 = scmp.ne.s32.totalorder %s152_s30, %s982_s29  ;;  %p988_p6 = scmp.lt.s32.totalorder %s1404_s16, %s982_s29 }
  0xa7   : > { %p984_p12 = pnand %p983_p10, %p782_p8  ;;  %p989_p0 = por %p988_p6, %p987_p13 }
  0xa9   : > { %p985_p11 = pneg %p984_p12 }
  0xab   : > { %p990_p1 = pnand %p989_p0, %p985_p11 }
  0xad   : > { %993 = shalt.err (!%p990_p1)  }
  0xae   : > { %s994_s27 = scalar_lea.vmem %s163_s5, 16  ;;  %p1001_p7 = scmp.lt.s32.totalorder %s163_s5, %s1387_s26 }
  0xaf   : > { %p995_p2 = scmp.ne.s32.totalorder %s163_s5, %s994_s27  ;;  %p1002_p9 = scmp.lt.s32.totalorder %s1415_s24, %s994_s27 }
  0xb1   : > { %p996_p3 = pnand %p995_p2, %p782_p8  ;;  %p1003_p10 = por %p1002_p9, %p1001_p7 }
  0xb3   : > { %p997_p5 = pneg %p996_p3 }
  0xb5   : > { %p1004_p12 = pnand %p1003_p10, %p997_p5 }
  0xb7   : > { %1007 = shalt.err (!%p1004_p12)  }
  0xb8   : > { %749 = dma.hbm_to_vmem [thread:$0]  (%p782_p8), %s152_s30, 16, %s163_s5, [#allocation3 + $0x6] }
  0xb9   : > { %s680_s7 = sshll.u32 %s1510_s11, 4  ;;  %s1322_s8 = smov [#allocation2 + $0x7]  }
  0xba   : > { %s168_s28 = scalar_lea.hbm %s1882_s1, %s680_s7  ;;  %s178_s3 = sshll.u32 %s1322_s8, 4  ;;  %s179_s3 = int_to_ptr.vmem [resolvable:$true] %s178_s3 }
  0xbb   : > { %s1008_s4 = scalar_lea.hbm %s168_s28, 16  ;;  %p1013_p0 = scmp.lt.s32.totalorder %s168_s28, %s1882_s1 }
  0xbc   : > { %p1009_p11 = scmp.ne.s32.totalorder %s168_s28, %s1008_s4  ;;  %p1014_p1 = scmp.lt.s32.totalorder %s1404_s16, %s1008_s4 }
  0xbe   : > { %p1010_p13 = pnand %p1009_p11, %p782_p8  ;;  %p1015_p2 = por %p1014_p1, %p1013_p0 }
  0xc0   : > { %p1011_p6 = pneg %p1010_p13 }
  0xc2   : > { %p1016_p3 = pnand %p1015_p2, %p1011_p6 }
  0xc4   : > { %1019 = shalt.err (!%p1016_p3)  }
  0xc5   : > { %s1020_s11 = scalar_lea.vmem %s179_s3, 16  ;;  %p1027_p10 = scmp.lt.s32.totalorder %s179_s3, %s1387_s26 }
  0xc6   : > { %p1021_p5 = scmp.ne.s32.totalorder %s179_s3, %s1020_s11  ;;  %p1028_p12 = scmp.lt.s32.totalorder %s1415_s24, %s1020_s11 }
  0xc8   : > { %p1022_p7 = pnand %p1021_p5, %p782_p8  ;;  %p1029_p11 = por %p1028_p12, %p1027_p10 }
  0xca   : > { %p1023_p9 = pneg %p1022_p7 }
  0xcc   : > { %p1030_p13 = pnand %p1029_p11, %p1023_p9 }
  0xce   : > { %1033 = shalt.err (!%p1030_p13)  }
  0xcf   : > { %750 = dma.hbm_to_vmem [thread:$0]  (%p782_p8), %s168_s28, 16, %s179_s3, [#allocation3 + $0x7] }
  0xd0   : > { %p783_p6 = scmp.lt.s32.totalorder %s1359_s15, 2  ;;  %p187_p0 = scmp.lt.s32.totalorder %s1359_s15, 0 }
  0xd1   : > { %s188_s5 = ssub.s32 0, %s1359_s15  ;;  %s740_s23 = sshll.u32 %s1312_s14, 3 }
  0xd2   : > { %s682_s30 = smin.u32 %s188_s5, %s1359_s15  ;;  %s1569_s29 = sadd.s32 8, %s740_s23 }
  0xd3   : > { %s190_s0 = sand.u32 1, %s682_s30   ;;  %s217_s27 = sadd.s32 1, %s1569_s29 }
  0xd4   : > { %s191_s17 = ssub.s32 0, %s190_s0  ;;  %s235_s8 = sadd.s32 2, %s1569_s29 }
  0xd5   : > { %s1902_s17 = smov (!%p187_p0, %s191_s17), %s190_s0 }
  0xd6   : > { %s752_s7 = scalar_select %p783_p6, [#allocation5], [#allocation42] }
  0xd7   : > { %p684_p1 = scmp.lt.s32.totalorder %s1902_s17, 0  ;;  %s197_s6 = sadd.s32 2, %s1902_s17 }
  0xd8   : > { %s753_s10 = scalar_select %p783_p6, %s1569_s29, 0 }
  0xd9   : > { %s1904_s6 = smov (!%p684_p1, %s197_s6), %s1902_s17 }
  0xda   : > { %s200_s28 = sld [smem:[%s752_s7 + %s753_s10]]  ;;  %s687_s3 = sshll.u32 %s1904_s6, 3 }
  0xdb   : > { %s1579_s9 = scalar_lea.vmem [#allocation2], %s687_s3  ;;  %s1583_s5 = scalar_lea.sflag [#allocation3], %s687_s3 }
  0xdc   : > { %s213_s25 = sshll.u32 %s1579_s9, 4  ;;  %s565_s11 = scalar_lea.vmem %s1579_s9, 1 [#allocation2]  ;;  %s214_s25 = int_to_ptr.vmem [resolvable:$true] %s213_s25 }
  0xdd   : > { %s755_s30 = scalar_select %p783_p6, [#allocation5], [#allocation43] }
  0xde   : > { %s231_s17 = sshll.u32 %s565_s11, 4  ;;  %s1591_s17 = int_to_ptr.vmem [resolvable:$true] %s231_s17 }
  0xe0   : > { %s686_s0 = sshll.u32 %s200_s28, 4 }
  0xe1   : > { %s202_s6 = scalar_lea.hbm %s1882_s1, %s686_s0 }
  0xe2   : > { %s1034_s21 = scalar_lea.hbm %s202_s6, 16  ;;  %p1039_p5 = scmp.lt.s32.totalorder %s202_s6, %s1882_s1 }
  0xe3   : > { %p1035_p8 = scmp.ne.s32.totalorder %s202_s6, %s1034_s21  ;;  %p1040_p7 = scmp.lt.s32.totalorder %s1404_s16, %s1034_s21 }
  0xe5   : > { %p1036_p2 = pnand %p1035_p8, %p783_p6  ;;  %p1041_p9 = por %p1040_p7, %p1039_p5 }
  0xe7   : > { %p1037_p3 = pneg %p1036_p2 }
  0xe9   : > { %p1042_p10 = pnand %p1041_p9, %p1037_p3 }
  0xeb   : > { %1045 = shalt.err (!%p1042_p10)  }
  0xec   : > { %s1046_s28 = scalar_lea.vmem %s214_s25, 16  ;;  %p1053_p0 = scmp.lt.s32.totalorder %s214_s25, %s1387_s26 }
  0xed   : > { %p1047_p12 = scmp.ne.s32.totalorder %s214_s25, %s1046_s28  ;;  %p1054_p1 = scmp.lt.s32.totalorder %s1415_s24, %s1046_s28 }
  0xef   : > { %p1048_p11 = pnand %p1047_p12, %p783_p6  ;;  %p1055_p8 = por %p1054_p1, %p1053_p0 }
  0xf1   : > { %p1049_p13 = pneg %p1048_p11 }
  0xf3   : > { %p1056_p2 = pnand %p1055_p8, %p1049_p13 }
  0xf5   : > { %1059 = shalt.err (!%p1056_p2)  }
  0xf6   : > { %754 = dma.hbm_to_vmem [thread:$0]  (%p783_p6), %s202_s6, 16, %s214_s25, %s1583_s5 }
  0xf7   : > { %s1906_s27 = smov (!%p783_p6, %s217_s27), 0  ;;  %s573_s11 = scalar_lea.vmem %s1579_s9, 2 [#allocation2] }
  0xf8   : > { %s758_s21 = scalar_select %p783_p6, [#allocation5], [#allocation44] }
  0xf9   : > { %s218_s4 = sld [smem:[%s755_s30 + %s1906_s27]]  ;;  %s1908_s8 = smov (!%p783_p6, %s235_s8), 0 }
  0xfa   : > { %s576_s0 = scalar_lea.sflag %s1583_s5, 2 [#allocation3]  ;;  %s249_s7 = sshll.u32 %s573_s11, 4  ;;  %s1620_s7 = int_to_ptr.vmem [resolvable:$true] %s249_s7 }
  0xfb   : > { %s1618_s10 = sld [smem:[%s758_s21 + %s1908_s8]]  ;;  %s1890_s6 = sadd.s32 3, %s1569_s29 }
  0xfc   : > { %s761_s25 = scalar_select %p783_p6, [#allocation5], [#allocation45] }
  0xfd   : > { %s1910_s6 = smov (!%p783_p6, %s1890_s6), 0  ;;  %s581_s28 = scalar_lea.vmem %s1579_s9, 3 [#allocation2] }
  0xfe   : > { %s1632_s18 = sld [smem:[%s761_s25 + %s1910_s6]] }
  0xff   : > { %s688_s3 = sshll.u32 %s218_s4, 4 }
 0x100   : > { %s220_s30 = scalar_lea.hbm %s1882_s1, %s688_s3 }
 0x101   : > { %s1060_s20 = scalar_lea.hbm %s220_s30, 16  ;;  %p1065_p9 = scmp.lt.s32.totalorder %s220_s30, %s1882_s1 }
 0x102   : > { %p1061_p3 = scmp.ne.s32.totalorder %s220_s30, %s1060_s20  ;;  %p1066_p10 = scmp.lt.s32.totalorder %s1404_s16, %s1060_s20 }
 0x104   : > { %p1062_p5 = pnand %p1061_p3, %p783_p6  ;;  %p1067_p12 = por %p1066_p10, %p1065_p9 }
 0x106   : > { %p1063_p7 = pneg %p1062_p5 }
 0x108   : > { %p1068_p11 = pnand %p1067_p12, %p1063_p7 }
 0x10a   : > { %1071 = shalt.err (!%p1068_p11)  }
 0x10b   : > { %s1072_s23 = scalar_lea.vmem %s1591_s17, 16  ;;  %p1079_p8 = scmp.lt.s32.totalorder %s1591_s17, %s1387_s26 }
 0x10c   : > { %p1073_p13 = scmp.ne.s32.totalorder %s1591_s17, %s1072_s23  ;;  %p1080_p2 = scmp.lt.s32.totalorder %s1415_s24, %s1072_s23 }
 0x10e   : > { %p1074_p0 = pnand %p1073_p13, %p783_p6  ;;  %p1081_p3 = por %p1080_p2, %p1079_p8 }
 0x110   : > { %p1075_p1 = pneg %p1074_p0 }
 0x112   : > { %p1082_p5 = pnand %p1081_p3, %p1075_p1 }
 0x114   : > { %1085 = shalt.err (!%p1082_p5)  }
 0x115   : > { %s1891_s20 = scalar_lea.sflag %s1583_s5, 1 [#allocation3]  ;;  %s691_s4 = sshll.u32 %s1618_s10, 4 }
 0x116   : > { %757 = dma.hbm_to_vmem [thread:$0]  (%p783_p6), %s220_s30, 16, %s1591_s17, %s1891_s20 }
 0x117   : > { %s238_s6 = scalar_lea.hbm %s1882_s1, %s691_s4  ;;  %s267_s3 = sshll.u32 %s581_s28, 4  ;;  %s268_s3 = int_to_ptr.vmem [resolvable:$true] %s267_s3 }
 0x118   : > { %s1086_s27 = scalar_lea.hbm %s238_s6, 16  ;;  %p1091_p12 = scmp.lt.s32.totalorder %s238_s6, %s1882_s1 }
 0x119   : > { %p1087_p7 = scmp.ne.s32.totalorder %s238_s6, %s1086_s27  ;;  %p1092_p11 = scmp.lt.s32.totalorder %s1404_s16, %s1086_s27 }
 0x11b   : > { %p1088_p9 = pnand %p1087_p7, %p783_p6  ;;  %p1093_p13 = por %p1092_p11, %p1091_p12 }
 0x11d   : > { %p1089_p10 = pneg %p1088_p9 }
 0x11f   : > { %p1094_p0 = pnand %p1093_p13, %p1089_p10 }
 0x121   : > { %1097 = shalt.err (!%p1094_p0)  }
 0x122   : > { %s1098_s17 = scalar_lea.vmem %s1620_s7, 16  ;;  %p1105_p3 = scmp.lt.s32.totalorder %s1620_s7, %s1387_s26 }
 0x123   : > { %p1099_p1 = scmp.ne.s32.totalorder %s1620_s7, %s1098_s17  ;;  %p1106_p5 = scmp.lt.s32.totalorder %s1415_s24, %s1098_s17 }
 0x125   : > { %p1100_p8 = pnand %p1099_p1, %p783_p6  ;;  %p1107_p7 = por %p1106_p5, %p1105_p3 }
 0x127   : > { %p1101_p2 = pneg %p1100_p8 }
 0x129   : > { %p1108_p9 = pnand %p1107_p7, %p1101_p2 }
 0x12b   : > { %1111 = shalt.err (!%p1108_p9)  }
 0x12c   : > { %760 = dma.hbm_to_vmem [thread:$0]  (%p783_p6), %s238_s6, 16, %s1620_s7, %s576_s0 }
 0x12d   : > { %s584_s10 = scalar_lea.sflag %s1583_s5, 3 [#allocation3]  ;;  %s694_s28 = sshll.u32 %s1632_s18, 4 }
 0x12e   : > { %s271_s30 = sadd.s32 4, %s1569_s29  ;;  %s256_s4 = scalar_lea.hbm %s1882_s1, %s694_s28 }
 0x12f   : > { %s589_s11 = scalar_lea.vmem %s1579_s9, 4 [#allocation2]  ;;  %s1112_s25 = scalar_lea.hbm %s256_s4, 16 }
 0x130   : > { %p1113_p10 = scmp.ne.s32.totalorder %s256_s4, %s1112_s25  ;;  %p1117_p13 = scmp.lt.s32.totalorder %s256_s4, %s1882_s1 }
 0x131   : > { %p1118_p0 = scmp.lt.s32.totalorder %s1404_s16, %s1112_s25 }
 0x132   : > { %p1114_p12 = pnand %p1113_p10, %p783_p6 }
 0x133   : > { %p1119_p1 = por %p1118_p0, %p1117_p13 }
 0x134   : > { %p1115_p11 = pneg %p1114_p12 }
 0x136   : > { %p1120_p8 = pnand %p1119_p1, %p1115_p11 }
 0x138   : > { %1123 = shalt.err (!%p1120_p8)  }
 0x139   : > { %s1124_s18 = scalar_lea.vmem %s268_s3, 16  ;;  %p1131_p7 = scmp.lt.s32.totalorder %s268_s3, %s1387_s26 }
 0x13a   : > { %p1125_p2 = scmp.ne.s32.totalorder %s268_s3, %s1124_s18  ;;  %p1132_p9 = scmp.lt.s32.totalorder %s1415_s24, %s1124_s18 }
 0x13c   : > { %p1126_p3 = pnand %p1125_p2, %p783_p6  ;;  %p1133_p10 = por %p1132_p9, %p1131_p7 }
 0x13e   : > { %p1127_p5 = pneg %p1126_p3 }
 0x140   : > { %p1134_p12 = pnand %p1133_p10, %p1127_p5 }
 0x142   : > { %1137 = shalt.err (!%p1134_p12)  }
 0x143   : > { %763 = dma.hbm_to_vmem [thread:$0]  (%p783_p6), %s256_s4, 16, %s268_s3, %s584_s10 }
 0x144   : > { %s764_s0 = scalar_select %p783_p6, [#allocation5], [#allocation46] }
 0x145   : > { %s1912_s30 = smov (!%p783_p6, %s271_s30), 0  ;;  %s285_s7 = sshll.u32 %s589_s11, 4  ;;  %s286_s7 = int_to_ptr.vmem [resolvable:$true] %s285_s7 }
 0x146   : > { %s289_s6 = sadd.s32 5, %s1569_s29  ;;  %s272_s21 = sld [smem:[%s764_s0 + %s1912_s30]] }
 0x147   : > { %s597_s17 = scalar_lea.vmem %s1579_s9, 5 [#allocation2]  ;;  %s1914_s6 = smov (!%p783_p6, %s289_s6), 0 }
 0x148   : > { %s767_s28 = scalar_select %p783_p6, [#allocation5], [#allocation47] }
 0x149   : > { %s592_s23 = scalar_lea.sflag %s1583_s5, 4 [#allocation3]  ;;  %s303_s20 = sshll.u32 %s597_s17, 4  ;;  %s1707_s20 = int_to_ptr.vmem [resolvable:$true] %s303_s20 }
 0x14a   : > { %s1704_s3 = sld [smem:[%s767_s28 + %s1914_s6]]  ;;  %s600_s10 = scalar_lea.sflag %s1583_s5, 5 [#allocation3] }
 0x14b   : > { %s605_s8 = scalar_lea.vmem %s1579_s9, 6 [#allocation2] }
 0x14c   : > { %s697_s4 = sshll.u32 %s272_s21, 4 }
 0x14d   : > { %s274_s30 = scalar_lea.hbm %s1882_s1, %s697_s4 }
 0x14e   : > { %s1138_s18 = scalar_lea.hbm %s274_s30, 16  ;;  %p1143_p1 = scmp.lt.s32.totalorder %s274_s30, %s1882_s1 }
 0x14f   : > { %p1139_p11 = scmp.ne.s32.totalorder %s274_s30, %s1138_s18  ;;  %p1144_p8 = scmp.lt.s32.totalorder %s1404_s16, %s1138_s18 }
 0x151   : > { %p1140_p13 = pnand %p1139_p11, %p783_p6  ;;  %p1145_p2 = por %p1144_p8, %p1143_p1 }
 0x153   : > { %p1141_p0 = pneg %p1140_p13 }
 0x155   : > { %p1146_p3 = pnand %p1145_p2, %p1141_p0 }
 0x157   : > { %1149 = shalt.err (!%p1146_p3)  }
 0x158   : > { %s1150_s6 = scalar_lea.vmem %s286_s7, 16  ;;  %p1157_p10 = scmp.lt.s32.totalorder %s286_s7, %s1387_s26 }
 0x159   : > { %p1151_p5 = scmp.ne.s32.totalorder %s286_s7, %s1150_s6  ;;  %p1158_p12 = scmp.lt.s32.totalorder %s1415_s24, %s1150_s6 }
 0x15b   : > { %p1152_p7 = pnand %p1151_p5, %p783_p6  ;;  %p1159_p11 = por %p1158_p12, %p1157_p10 }
 0x15d   : > { %p1153_p9 = pneg %p1152_p7 }
 0x15f   : > { %p1160_p13 = pnand %p1159_p11, %p1153_p9 }
 0x161   : > { %1163 = shalt.err (!%p1160_p13)  }
 0x162   : > { %766 = dma.hbm_to_vmem [thread:$0]  (%p783_p6), %s274_s30, 16, %s286_s7, %s592_s23 }
 0x163   : > { %s770_s21 = scalar_select %p783_p6, [#allocation5], [#allocation48] }
 0x164   : > { %s700_s28 = sshll.u32 %s1704_s3, 4  ;;  %s321_s4 = sshll.u32 %s605_s8, 4  ;;  %s1763_s4 = int_to_ptr.vmem [resolvable:$true] %s321_s4 }
 0x165   : > { %s292_s18 = scalar_lea.hbm %s1882_s1, %s700_s28  ;;  %s325_s0 = sadd.s32 7, %s1569_s29 }
 0x166   : > { %s1164_s17 = scalar_lea.hbm %s292_s18, 16  ;;  %p1169_p2 = scmp.lt.s32.totalorder %s292_s18, %s1882_s1 }
 0x167   : > { %p1165_p0 = scmp.ne.s32.totalorder %s292_s18, %s1164_s17  ;;  %p1170_p3 = scmp.lt.s32.totalorder %s1404_s16, %s1164_s17 }
 0x169   : > { %p1166_p1 = pnand %p1165_p0, %p783_p6  ;;  %p1171_p5 = por %p1170_p3, %p1169_p2 }
 0x16b   : > { %p1167_p8 = pneg %p1166_p1 }
 0x16d   : > { %p1172_p7 = pnand %p1171_p5, %p1167_p8 }
 0x16f   : > { %1175 = shalt.err (!%p1172_p7)  }
 0x170   : > { %s1176_s7 = scalar_lea.vmem %s1707_s20, 16  ;;  %p1183_p11 = scmp.lt.s32.totalorder %s1707_s20, %s1387_s26 }
 0x171   : > { %p1177_p9 = scmp.ne.s32.totalorder %s1707_s20, %s1176_s7  ;;  %p1184_p13 = scmp.lt.s32.totalorder %s1415_s24, %s1176_s7 }
 0x173   : > { %p1178_p10 = pnand %p1177_p9, %p783_p6  ;;  %p1185_p0 = por %p1184_p13, %p1183_p11 }
 0x175   : > { %p1179_p12 = pneg %p1178_p10 }
 0x177   : > { %p1186_p1 = pnand %p1185_p0, %p1179_p12 }
 0x179   : > { %1189 = shalt.err (!%p1186_p1)  }
 0x17a   : > { %769 = dma.hbm_to_vmem [thread:$0]  (%p783_p6), %s292_s18, 16, %s1707_s20, %s600_s10 }
 0x17b   : > { %s1892_s23 = sadd.s32 6, %s1569_s29  ;;  %s613_s30 = scalar_lea.vmem %s1579_s9, 7 [#allocation2] }
 0x17c   : > { %s1916_s23 = smov (!%p783_p6, %s1892_s23), 0  ;;  %s1918_s0 = smov (!%p783_p6, %s325_s0), 0 }
 0x17d   : > { %s773_s3 = scalar_select %p783_p6, [#allocation5], [#allocation49] }
 0x17e   : > { %s308_s25 = sld [smem:[%s770_s21 + %s1916_s23]]  ;;  %s608_s8 = scalar_lea.sflag %s1583_s5, 6 [#allocation3] }
 0x17f   : > { %s339_s28 = sshll.u32 %s613_s30, 4  ;;  %s1765_s11 = sld [smem:[%s773_s3 + %s1918_s0]]  ;;  %s1769_s28 = int_to_ptr.vmem [resolvable:$true] %s339_s28 }
 0x180   : > { %s616_s27 = scalar_lea.sflag %s1583_s5, 7 [#allocation3]  ;;  %s344_s20 = ssub.s32 0, %s1312_s14 }
 0x181   : > { %s1772_s29 = smin.u32 %s1312_s14, %s344_s20 }
 0x182   : > { %s346_s21 = sand.u32 1, %s1772_s29  }
 0x184   : > { %s703_s10 = sshll.u32 %s308_s25, 4 }
 0x185   : > { %s310_s17 = scalar_lea.hbm %s1882_s1, %s703_s10 }
 0x186   : > { %s1190_s6 = scalar_lea.hbm %s310_s17, 16  ;;  %p1195_p7 = scmp.lt.s32.totalorder %s310_s17, %s1882_s1 }
 0x187   : > { %p1191_p2 = scmp.ne.s32.totalorder %s310_s17, %s1190_s6  ;;  %p1196_p9 = scmp.lt.s32.totalorder %s1404_s16, %s1190_s6 }
 0x189   : > { %p1192_p3 = pnand %p1191_p2, %p783_p6  ;;  %p1197_p10 = por %p1196_p9, %p1195_p7 }
 0x18b   : > { %p1193_p5 = pneg %p1192_p3 }
 0x18d   : > { %p1198_p12 = pnand %p1197_p10, %p1193_p5 }
 0x18f   : > { %1201 = shalt.err (!%p1198_p12)  }
 0x190   : > { %s1202_s23 = scalar_lea.vmem %s1763_s4, 16  ;;  %p1209_p1 = scmp.lt.s32.totalorder %s1763_s4, %s1387_s26 }
 0x191   : > { %p1203_p11 = scmp.ne.s32.totalorder %s1763_s4, %s1202_s23  ;;  %p1210_p2 = scmp.lt.s32.totalorder %s1415_s24, %s1202_s23 }
 0x193   : > { %p1204_p13 = pnand %p1203_p11, %p783_p6  ;;  %p1211_p3 = por %p1210_p2, %p1209_p1 }
 0x195   : > { %p1205_p0 = pneg %p1204_p13 }
 0x197   : > { %p1212_p8 = pnand %p1211_p3, %p1205_p0 }
 0x199   : > { %1215 = shalt.err (!%p1212_p8)  }
 0x19a   : > { %772 = dma.hbm_to_vmem [thread:$0]  (%p783_p6), %s310_s17, 16, %s1763_s4, %s608_s8 }
 0x19b   : > { %s706_s3 = sshll.u32 %s1765_s11, 4  ;;  %s347_s25 = ssub.s32 0, %s346_s21 }
 0x19c   : > { %s328_s10 = scalar_lea.hbm %s1882_s1, %s706_s3 }
 0x19d   : > { %s1216_s9 = scalar_lea.hbm %s328_s10, 16  ;;  %p1221_p9 = scmp.lt.s32.totalorder %s328_s10, %s1882_s1 }
 0x19e   : > { %p1217_p5 = scmp.ne.s32.totalorder %s328_s10, %s1216_s9  ;;  %p1222_p10 = scmp.lt.s32.totalorder %s1404_s16, %s1216_s9 }
 0x1a0   : > { %p1218_p8 = pnand %p1217_p5, %p783_p6  ;;  %p1223_p12 = por %p1222_p10, %p1221_p9 }
 0x1a2   : > { %p1219_p7 = pneg %p1218_p8 }
 0x1a4   : > { %p1224_p11 = pnand %p1223_p12, %p1219_p7 }
 0x1a6   : > { %1227 = shalt.err (!%p1224_p11)  }
 0x1a7   : > { %s1228_s4 = scalar_lea.vmem %s1769_s28, 16  ;;  %p1235_p2 = scmp.lt.s32.totalorder %s1769_s28, %s1387_s26 }
 0x1a8   : > { %p1229_p13 = scmp.ne.s32.totalorder %s1769_s28, %s1228_s4  ;;  %p1236_p3 = scmp.lt.s32.totalorder %s1415_s24, %s1228_s4 }
 0x1aa   : > { %p1230_p0 = pnand %p1229_p13, %p783_p6  ;;  %p1237_p5 = por %p1236_p3, %p1235_p2 }
 0x1ac   : > { %p1231_p1 = pneg %p1230_p0 }
 0x1ae   : > { %p1238_p8 = pnand %p1237_p5, %p1231_p1 }
 0x1b0   : > { %1241 = shalt.err (!%p1238_p8)  }
 0x1b1   : > { %775 = dma.hbm_to_vmem [thread:$0]  (%p783_p6), %s328_s10, 16, %s1769_s28, %s616_s27 }
 0x1b2   : > { %p1893_p7 = scmp.lt.s32.totalorder %s1312_s14, 0  ;;  %s51_s24 = scalar_lea.vmem [#allocation6], %s1382_s22 }
 0x1b4   : > { %s1920_s25 = smov (!%p1893_p7, %s347_s25), %s346_s21 }
 0x1b5   : > { %p711_p9 = scmp.lt.s32.totalorder %s1920_s25, 0  ;;  %s353_s16 = sadd.s32 2, %s1920_s25 }
 0x1b7   : > { %s1922_s16 = smov (!%p711_p9, %s353_s16), %s1920_s25 }
 0x1b8   : > { %s712_s26 = sshll.u32 %s1922_s16, 3 }
 0x1b9   : > { %s356_s8 = scalar_lea.sflag [#allocation3], %s712_s26 }
 0x1ba   : > { %1282 = dma.done.wait %s356_s8, 16 }
 0x1bb   : > { %1283 = vsyncadd %s356_s8, 4294967280  ;;  %s621_s5 = scalar_lea.sflag %s356_s8, 1 [#allocation3] }
 0x1bc   : > { %1284 = dma.done.wait %s621_s5, 16 }
 0x1bd   : > { %1285 = vsyncadd %s621_s5, 4294967280  ;;  %s624_s11 = scalar_lea.sflag %s356_s8, 2 [#allocation3] }
 0x1be   : > { %1286 = dma.done.wait %s624_s11, 16 }
 0x1bf   : > { %1287 = vsyncadd %s624_s11, 4294967280  ;;  %s627_s28 = scalar_lea.sflag %s356_s8, 3 [#allocation3] }
 0x1c0   : > { %1288 = dma.done.wait %s627_s28, 16 }
 0x1c1   : > { %1289 = vsyncadd %s627_s28, 4294967280  ;;  %s630_s27 = scalar_lea.sflag %s356_s8, 4 [#allocation3] }
 0x1c2   : > { %1290 = dma.done.wait %s630_s27, 16 }
 0x1c3   : > { %1291 = vsyncadd %s630_s27, 4294967280  ;;  %s633_s29 = scalar_lea.sflag %s356_s8, 5 [#allocation3] }
 0x1c4   : > { %1292 = dma.done.wait %s633_s29, 16 }
 0x1c5   : > { %1293 = vsyncadd %s633_s29, 4294967280  ;;  %s636_s21 = scalar_lea.sflag %s356_s8, 6 [#allocation3] }
 0x1c6   : > { %1294 = dma.done.wait %s636_s21, 16 }
 0x1c7   : > { %1295 = vsyncadd %s636_s21, 4294967280  ;;  %s639_s17 = scalar_lea.sflag %s356_s8, 7 [#allocation3] }
 0x1c8   : > { %1296 = dma.done.wait %s639_s17, 16 }
 0x1c9   : > { %1297 = vsyncadd %s639_s17, 4294967280  ;;  %s721_s0 = sshll.u32 %s1312_s14, 7  ;;  %s404_s7 = sshll.u32 %s51_s24, 4  ;;  %s1839_s7 = int_to_ptr.vmem [resolvable:$true] %s404_s7 }
 0x1ca   : > { %s1837_s25 = scalar_lea.hbm %s1883_s2, %s721_s0  ;;  %s387_s30 = scalar_lea.vmem [#allocation2], %s712_s26 }
 0x1cb   : > { %v388_v0 = vld [vmem:[%s387_s30] sm:$0xff]  ;;  %s1894_s20 = sand.u32 1, %s1308_s13   ;;  %s1242_s9 = scalar_lea.vmem %s1839_s7, 128 }
 0x1cc   : > { %389 = vst [vmem:[%s51_s24] sm:$0xff] %v388_v0  ;;  %s391_s10 = scalar_lea.sflag [#allocation7], %s1894_s20  ;;  %p1243_p6 = scmp.ne.s32.totalorder %s1839_s7, %s1242_s9 }
 0x1cd   : > { %s1323_s18 = smov [#allocation6]  }
 0x1ce   : > { %p1244_p10 = pnand %p1243_p6, %p1370_p4  ;;  %s1246_s6 = sshll.u32 %s1323_s18, 4  ;;  %s1247_s6 = int_to_ptr.vmem [resolvable:$false] %s1246_s6 }
 0x1cf   : > { %s1248_s4 = scalar_lea.vmem %s1247_s6, 256  ;;  %p1249_p11 = scmp.lt.s32.totalorder %s1839_s7, %s1247_s6 }
 0x1d0   : > { %p1245_p12 = pneg %p1244_p10  ;;  %p1250_p13 = scmp.lt.s32.totalorder %s1248_s4, %s1242_s9 }
 0x1d2   : > { %p1251_p0 = por %p1250_p13, %p1249_p11 }
 0x1d4   : > { %p1252_p1 = pnand %p1251_p0, %p1245_p12 }
 0x1d6   : > { %1255 = shalt.err (!%p1252_p1)
}
 0x1d7   : > { %s1256_s22 = scalar_lea.hbm %s1837_s25, 128  ;;  %s1260_s24 = scalar_lea.hbm %s1883_s2, 256 }
 0x1d8   : > { %p1257_p2 = scmp.ne.s32.totalorder %s1837_s25, %s1256_s22  ;;  %p1261_p8 = scmp.lt.s32.totalorder %s1837_s25, %s1883_s2 }
 0x1d9   : > { %p1262_p7 = scmp.lt.s32.totalorder %s1260_s24, %s1256_s22 }
 0x1da   : > { %p1258_p3 = pnand %p1257_p2, %p1370_p4 }
 0x1db   : > { %p1263_p9 = por %p1262_p7, %p1261_p8 }
 0x1dc   : > { %p1259_p5 = pneg %p1258_p3 }
 0x1de   : > { %p1264_p6 = pnand %p1263_p9, %p1259_p5 }
 0x1e0   : > { %1267 = shalt.err (!%p1264_p6)
}
 0x1e1   : > { %776 = dma.vmem_to_hbm [thread:$0]  (%p1370_p4), %s1839_s7, 128, %s1837_s25, %s391_s10  }
 0x1e2 PF: > { %s1895_s11 = sld [smem:[#allocation61_spill]]  ;;  %p784_p10 = scmp.ge.s32.totalorder %s1312_s14, 1 }
 0x1e3   : > { %s416_s28 = sand.u32 1, %s1304_s12  }
 0x1e4   : > { %s417_s27 = scalar_lea.sflag [#allocation7], %s416_s28 }
 0x1e8   : > { %p1896_p12 = scmp.ne.s32.totalorder %s1895_s11, 0 }
 0x1ea   : > { %p779_p11 = pnand %p784_p10, %p1896_p12 }
 0x1ec   : > { %p780_p13 = pneg %p779_p11 }
 0x1ee   : > { %1299 = dma.done.wait (%p780_p13), %s417_s27, 128  }
 0x1ef   : > { %1301 = vsyncadd (%p780_p13), %s417_s27, 4294967168  ;;  %s1897_s29 = sld [smem:[#allocation60_spill]]  ;;  %p16_p0 = scmp.ge.s32.totalorder %s1359_s15, 3  }
 0x1f0   : > { %s1898_s12 = smov %s1308_s13  ;;  %s1900_s14 = smov %s1359_s15 }
 0x1f1   :  { %18 = sbr.rel (!%p16_p0) target bundleno = 8 (0x8), region = 186 }
 0x1f5   : > { %s1899_s13 = smov %s1897_s29 }
 0x1f6   :  { %422 = vsyncpa [#allocation7], 1 }
 0x1f7   :  { %424 = vsyncpa [#allocation7 + $0x1], 1 }
 0x1f8   :  { %425 = vsyncmov [#allocation3] }
 0x1fb   :  { %s426_s14 = vpop.sfrf %425 }
 0x1fc   :  { %p724_p4 = scmp.ne.s32.totalorder %s426_s14, 0 }
 0x1fe   :  { %430 = shalt.err (%p724_p4)  }
 0x1ff   :  { %432 = vsyncmov [#allocation3 + $0x1] }
 0x202   :  { %s433_s19 = vpop.sfrf %432 }
 0x203   :  { %p725_p1 = scmp.ne.s32.totalorder %s433_s19, 0 }
 0x205   :  { %437 = shalt.err (%p725_p1)  }
 0x206   :  { %439 = vsyncmov [#allocation3 + $0x2] }
 0x209   :  { %s440_s21 = vpop.sfrf %439 }
 0x20a   :  { %p726_p2 = scmp.ne.s32.totalorder %s440_s21, 0 }
 0x20c   :  { %444 = shalt.err (%p726_p2)  }
 0x20d   :  { %446 = vsyncmov [#allocation3 + $0x3] }
 0x210   :  { %s447_s17 = vpop.sfrf %446 }
 0x211   :  { %p727_p3 = scmp.ne.s32.totalorder %s447_s17, 0 }
 0x213   :  { %451 = shalt.err (%p727_p3)  }
 0x214   :  { %453 = vsyncmov [#allocation3 + $0x4] }
 0x217   :  { %s454_s15 = vpop.sfrf %453 }
 0x218   :  { %p728_p5 = scmp.ne.s32.totalorder %s454_s15, 0 }
 0x21a   :  { %458 = shalt.err (%p728_p5)  }
 0x21b   :  { %460 = vsyncmov [#allocation3 + $0x5] }
 0x21e   :  { %s461_s1 = vpop.sfrf %460 }
 0x21f   :  { %p729_p8 = scmp.ne.s32.totalorder %s461_s1, 0 }
 0x221   :  { %465 = shalt.err (%p729_p8)  }
 0x222   :  { %467 = vsyncmov [#allocation3 + $0x6] }
 0x225   :  { %s468_s2 = vpop.sfrf %467 }
 0x226   :  { %p730_p7 = scmp.ne.s32.totalorder %s468_s2, 0 }
 0x228   :  { %472 = shalt.err (%p730_p7)  }
 0x229   :  { %474 = vsyncmov [#allocation3 + $0x7] }
 0x22c   :  { %s475_s12 = vpop.sfrf %474 }
 0x22d   :  { %p731_p9 = scmp.ne.s32.totalorder %s475_s12, 0 }
 0x22f   :  { %479 = shalt.err (%p731_p9)  }
 0x230   :  { %481 = vsyncmov [#allocation3 + $0x8] }
 0x233   :  { %s482_s13 = vpop.sfrf %481 }
 0x234   :  { %p732_p6 = scmp.ne.s32.totalorder %s482_s13, 0 }
 0x236   :  { %486 = shalt.err (%p732_p6)  }
 0x237   :  { %488 = vsyncmov [#allocation3 + $0x9] }
 0x23a   :  { %s489_s0 = vpop.sfrf %488 }
 0x23b   :  { %p733_p10 = scmp.ne.s32.totalorder %s489_s0, 0 }
 0x23d   :  { %493 = shalt.err (%p733_p10)  }
 0x23e   :  { %495 = vsyncmov [#allocation3 + $0xa] }
 0x241   :  { %s496_s7 = vpop.sfrf %495 }
 0x242   :  { %p734_p12 = scmp.ne.s32.totalorder %s496_s7, 0 }
 0x244   :  { %500 = shalt.err (%p734_p12)  }
 0x245   :  { %502 = vsyncmov [#allocation3 + $0xb] }
 0x248   :  { %s503_s23 = vpop.sfrf %502 }
 0x249   :  { %p735_p11 = scmp.ne.s32.totalorder %s503_s23, 0 }
 0x24b   :  { %507 = shalt.err (%p735_p11)  }
 0x24c   :  { %509 = vsyncmov [#allocation3 + $0xc] }
 0x24f   :  { %s510_s3 = vpop.sfrf %509 }
 0x250   :  { %p736_p13 = scmp.ne.s32.totalorder %s510_s3, 0 }
 0x252   :  { %514 = shalt.err (%p736_p13)  }
 0x253   :  { %516 = vsyncmov [#allocation3 + $0xd] }
 0x256   :  { %s517_s25 = vpop.sfrf %516 }
 0x257   :  { %p737_p0 = scmp.ne.s32.totalorder %s517_s25, 0 }
 0x259   :  { %521 = shalt.err (%p737_p0)  }
 0x25a   :  { %523 = vsyncmov [#allocation3 + $0xe] }
 0x25d   :  { %s524_s30 = vpop.sfrf %523 }
 0x25e   :  { %p738_p4 = scmp.ne.s32.totalorder %s524_s30, 0 }
 0x260   :  { %528 = shalt.err (%p738_p4)  }
 0x261   :  { %530 = vsyncmov [#allocation3 + $0xf] }
 0x264   :  { %s531_s20 = vpop.sfrf %530 }
 0x265   :  { %p739_p1 = scmp.ne.s32.totalorder %s531_s20, 0 }
 0x267   :  { %535 = shalt.err (%p739_p1)  }

</bundles_post_ra>
